<compile_context>
chip_gen: v7x
topology: tpu7x:2x2x1
jax: 0.10.0
libtpu: 0.0.40
codegen_flags: <defaults>
</compile_context>

<pallas_src>
import functools

import jax
import jax.numpy as jnp
from jax import lax
from jax.experimental import pallas as pl
from jax.experimental.pallas import tpu as pltpu


CH = 32       # conv channels
HID = 128     # FC hidden width

_VMEM = pl.BlockSpec(memory_space=pltpu.MemorySpace.VMEM)
_CNHW_DN = ("CNHW", "OIHW", "CNHW")   # activations kept channel-first, batch second


# ----------------------------------------------------------------------------
# Pallas kernel 1: lane-dense transposed conv GEMM
#   o^T = act(W @ a^T + b)   w:(OC,F) bf16, at:(F,M) bf16, b:(OC,1) f32
#   -> o:(OC,M) f32, M = B*Ho*Wo in the lane axis (multiple of 128 for the
#   big layers -> unmasked stores), fp32 MXU accumulation.
# ----------------------------------------------------------------------------
def _conv_gemm_t_kernel(w_ref, at_ref, b_ref, o_ref, *, activation):
    acc = jnp.dot(w_ref[...], at_ref[...], preferred_element_type=jnp.float32)
    acc = acc + b_ref[...]
    if activation == "relu":
        acc = jnp.maximum(acc, 0.0)
    elif activation == "sigmoid":
        acc = jax.nn.sigmoid(acc)
    o_ref[...] = acc


def conv_gemm_t(w, at, b, activation):
    OC, F = w.shape
    F2, M = at.shape
    assert F == F2, (w.shape, at.shape)
    kernel = functools.partial(_conv_gemm_t_kernel, activation=activation)
    return pl.pallas_call(
        kernel,
        out_shape=jax.ShapeDtypeStruct((OC, M), jnp.float32),
        in_specs=[_VMEM, _VMEM, _VMEM],
        out_specs=_VMEM,
    )(w, at, b.reshape(OC, 1).astype(jnp.float32))


# ----------------------------------------------------------------------------
# Pallas kernel 2: fused latent pipeline (single launch, weights resident)
#   h1 = relu(h0 @ W1 + b1)
#   mu = h1 @ W2mu + b2mu ; logvar = h1 @ W2lv + b2lv
#   z  = mu + exp(0.5*logvar)*eps        (training)   else  z = mu
#   d1 = relu(z @ W3 + b3) ; d2 = relu(d1 @ W4 + b4)
# All math f32; mu/logvar/d2 are the only HBM outputs.
# ----------------------------------------------------------------------------
def _latent_kernel(h0_ref, eps_ref,
                   w1_ref, b1_ref, w2m_ref, b2m_ref, w2v_ref, b2v_ref,
                   w3_ref, b3_ref, w4_ref, b4_ref,
                   d_ref, mu_ref, lv_ref, *, training):
    h1 = jnp.dot(h0_ref[...], w1_ref[...], preferred_element_type=jnp.float32)
    h1 = jnp.maximum(h1 + b1_ref[...], 0.0)

    mu = jnp.dot(h1, w2m_ref[...], preferred_element_type=jnp.float32) + b2m_ref[...]
    logvar = jnp.dot(h1, w2v_ref[...], preferred_element_type=jnp.float32) + b2v_ref[...]
    mu_ref[...] = mu
    lv_ref[...] = logvar

    if training:
        z = mu + jnp.exp(0.5 * logvar) * eps_ref[...]
    else:
        z = mu

    d1 = jnp.dot(z, w3_ref[...], preferred_element_type=jnp.float32)
    d1 = jnp.maximum(d1 + b3_ref[...], 0.0)
    d2 = jnp.dot(d1, w4_ref[...], preferred_element_type=jnp.float32)
    d_ref[...] = jnp.maximum(d2 + b4_ref[...], 0.0)


def latent_block(h0, eps, params, n_latents, training):
    B, _ = h0.shape
    flat_out = params["dec_fc2_w"].shape[1]
    w2, b2 = params["enc_fc2_w"], params["enc_fc2_b"]
    args = [
        h0.astype(jnp.float32),
        eps.astype(jnp.float32),
        params["enc_fc1_w"], params["enc_fc1_b"].reshape(1, -1),
        w2[:, :n_latents], b2[:n_latents].reshape(1, -1),
        w2[:, n_latents:], b2[n_latents:].reshape(1, -1),
        params["dec_fc1_w"], params["dec_fc1_b"].reshape(1, -1),
        params["dec_fc2_w"], params["dec_fc2_b"].reshape(1, -1),
    ]
    kernel = functools.partial(_latent_kernel, training=training)
    return pl.pallas_call(
        kernel,
        out_shape=(jax.ShapeDtypeStruct((B, flat_out), jnp.float32),   # d2
                   jax.ShapeDtypeStruct((B, n_latents), jnp.float32),  # mu
                   jax.ShapeDtypeStruct((B, n_latents), jnp.float32)), # logvar
        in_specs=[_VMEM] * 12,
        out_specs=(_VMEM, _VMEM, _VMEM),
    )(*args)


# ----------------------------------------------------------------------------
# Conv / ConvTranspose: im2col in CNHW layout (glue) + Pallas GEMM (compute)
# ----------------------------------------------------------------------------
def _patches_t(x_cnhw, kh, kw, stride, pad, lhs_dilation=(1, 1)):
    """x: (C,B,H,W) -> (patches^T (C*kh*kw, B*Ho*Wo)  [feature axis c-major], (B,Ho,Wo))."""
    p = lax.conv_general_dilated_patches(
        x_cnhw, filter_shape=(kh, kw),
        window_strides=(stride, stride),
        padding=((pad, pad), (pad, pad)),
        lhs_dilation=lhs_dilation,
        dimension_numbers=_CNHW_DN)
    F, B, Ho, Wo = p.shape
    return p.reshape(F, B * Ho * Wo), (B, Ho, Wo)


def conv2d_cnhw(x, weight, bias, stride, padding, activation):
    """x: (C,B,H,W); weight: (OC,IC,kh,kw) (PyTorch Conv2d). Returns (OC,B,Ho,Wo)."""
    OC, IC, kh, kw = weight.shape
    at, (B, Ho, Wo) = _patches_t(x.astype(jnp.bfloat16), kh, kw, stride, padding)
    w = weight.reshape(OC, IC * kh * kw).astype(jnp.bfloat16)
    y = conv_gemm_t(w, at, bias, activation)          # (OC, B*Ho*Wo)
    return y.reshape(OC, B, Ho, Wo)


def conv_transpose2d_cnhw(x, weight, bias, stride, padding, activation):
    """x: (C,B,H,W); weight: (IC,OC,kh,kw) (PyTorch ConvTranspose2d). Returns (OC,B,Ho,Wo)."""
    IC, OC, kh, kw = weight.shape
    pad = kh - 1 - padding
    # TODO(synk): at realistic image sizes, replace the lhs_dilation im2col with
    # the sub-pixel (stride^2 sub-conv) decomposition to avoid the ~75%
    # structural zeros in each patch row.
    at, (B, Ho, Wo) = _patches_t(x.astype(jnp.bfloat16), kh, kw, 1, pad,
                                 lhs_dilation=(stride, stride))
    # Equivalent forward-conv weight: swap in/out channels, flip spatially.
    w_eq = jnp.flip(weight, axis=(2, 3)).transpose(1, 0, 2, 3)   # (OC, IC, kh, kw)
    w = w_eq.reshape(OC, IC * kh * kw).astype(jnp.bfloat16)
    y = conv_gemm_t(w, at, bias, activation)
    return y.reshape(OC, B, Ho, Wo)


# ----------------------------------------------------------------------------
# Parameters (deterministic init) and forward
# ----------------------------------------------------------------------------
def init_params(key, input_shape, n_latents):
    C, H, W = input_shape
    sp = H // 4                      # spatial size after 2 stride-2 convs
    flat = CH * sp * sp
    ks = jax.random.split(key, 16)

    def nrm(k, shape, scale=0.05):
        return (scale * jax.random.normal(k, shape)).astype(jnp.float32)

    return {
        # encoder
        "enc_conv1_w": nrm(ks[0], (CH, C, 4, 4)),  "enc_conv1_b": nrm(ks[1], (CH,)),
        "enc_conv2_w": nrm(ks[2], (CH, CH, 4, 4)), "enc_conv2_b": nrm(ks[3], (CH,)),
        "enc_fc1_w":   nrm(ks[4], (flat, HID)),    "enc_fc1_b":   nrm(ks[5], (HID,)),
        "enc_fc2_w":   nrm(ks[6], (HID, 2 * n_latents)),
        "enc_fc2_b":   nrm(ks[7], (2 * n_latents,)),
        # decoder
        "dec_fc1_w":   nrm(ks[8], (n_latents, HID)),  "dec_fc1_b": nrm(ks[9], (HID,)),
        "dec_fc2_w":   nrm(ks[10], (HID, flat)),      "dec_fc2_b": nrm(ks[11], (flat,)),
        "dec_dcv1_w":  nrm(ks[12], (CH, CH, 4, 4)),   "dec_dcv1_b": nrm(ks[13], (CH,)),
        "dec_dcv2_w":  nrm(ks[14], (CH, C, 4, 4)),    "dec_dcv2_b": nrm(ks[15], (C,)),
    }


def betacvae_forward(params, x, eps, input_shape, n_latents, training=True):
    """Returns (reconstructed, mu, logvar) — same contract as BetaCVAE.forward."""
    C, H, W = input_shape
    B = x.shape[0]
    sp = H // 4

    # Single layout conversion at entry: NCHW -> CNHW (channel-first).
    xc = jnp.transpose(x, (1, 0, 2, 3))

    # ---- Encoder convs (lane axis = B*Ho*Wo, lane-dense stores) ----
    h = conv2d_cnhw(xc, params["enc_conv1_w"], params["enc_conv1_b"], 2, 1, "relu")
    h = conv2d_cnhw(h, params["enc_conv2_w"], params["enc_conv2_b"], 2, 1, "relu")

    # flatten like torch's NCHW .view(B, -1)  (tiny (32,2,4,4) transpose)
    h0 = jnp.transpose(h, (1, 0, 2, 3)).reshape(B, -1)

    # ---- Fused FC / latent pipeline (one pallas_call) ----
    d2, mu, logvar = latent_block(h0, eps, params, n_latents, training)

    # back to CNHW for the decoder convs (tiny (2,32,4,4) transpose)
    d = jnp.transpose(d2.reshape(B, CH, sp, sp), (1, 0, 2, 3))

    # ---- Decoder convs ----
    d = conv_transpose2d_cnhw(d, params["dec_dcv1_w"], params["dec_dcv1_b"], 2, 1, "relu")
    r = conv_transpose2d_cnhw(d, params["dec_dcv2_w"], params["dec_dcv2_b"], 2, 1, "sigmoid")

    # Single layout conversion at exit: CNHW -> NCHW.
    reconstructed = jnp.transpose(r, (1, 0, 2, 3))
    return reconstructed, mu, logvar


betacvae_forward_jit = jax.jit(
    betacvae_forward, static_argnames=("input_shape", "n_latents", "training"))


# ----------------------------------------------------------------------------
if __name__ == "__main__":
    key = jax.random.PRNGKey(0)
    B = 2
    input_shape = (4, 16, 16)      # (C, H, W)
    n_latents = 8

    k_params, k_x, k_eps = jax.random.split(key, 3)
    params = init_params(k_params, input_shape, n_latents)
    x = jax.random.uniform(k_x, (B,) + input_shape, dtype=jnp.float32)     # in [0,1)
    eps = jax.random.normal(k_eps, (B, n_latents), dtype=jnp.float32)

    recon, mu, logvar = betacvae_forward_jit(params, x, eps, input_shape, n_latents,
                                             training=True)
    jax.block_until_ready((recon, mu, logvar))

    assert recon.shape == x.shape and recon.dtype == jnp.float32
    assert mu.shape == (B, n_latents) and logvar.shape == (B, n_latents)
    assert bool(jnp.all((recon >= 0.0) & (recon <= 1.0)))   # sigmoid output range
    assert bool(jnp.all(jnp.isfinite(recon)))

    print("KERNEL_OK")
</pallas_src>

<mosaic_0001>
module attributes {stable_mosaic.version = 11 : i64} {
  func.func @_conv_gemm_t_kernel(%arg0: memref<32x64xbf16, #tpu.memory_space<vmem>>, %arg1: memref<64x128xbf16, #tpu.memory_space<vmem>>, %arg2: memref<32x1xf32, #tpu.memory_space<vmem>>, %arg3: memref<32x128xf32, #tpu.memory_space<vmem>>) attributes {dimension_semantics = [], scalar_prefetch = 0 : i64, scratch_operands = 0 : i64, tpu.core_type = #tpu.core_type<tc>} {
    %c0 = arith.constant 0 : index
    %c0_0 = arith.constant 0 : index
    %0 = vector.load %arg0[%c0, %c0_0] : memref<32x64xbf16, #tpu.memory_space<vmem>>, vector<32x64xbf16>
    %c0_1 = arith.constant 0 : index
    %c0_2 = arith.constant 0 : index
    %1 = vector.load %arg1[%c0_1, %c0_2] : memref<64x128xbf16, #tpu.memory_space<vmem>>, vector<64x128xbf16>
    %cst = arith.constant dense<0.000000e+00> : vector<32x128xf32>
    %2 = tpu.matmul %0, %1, %cst {dimension_numbers = #tpu.dot_dimension_numbers<[1], [0], [0], [1], [0, 0, 1, 1], [], []>} : vector<32x64xbf16>, vector<64x128xbf16>, vector<32x128xf32> -> vector<32x128xf32>
    %c0_3 = arith.constant 0 : index
    %c0_4 = arith.constant 0 : index
    %3 = vector.load %arg2[%c0_3, %c0_4] : memref<32x1xf32, #tpu.memory_space<vmem>>, vector<32x1xf32>
    %4 = vector.broadcast %3 : vector<32x1xf32> to vector<32x128xf32>
    %5 = arith.addf %2, %4 : vector<32x128xf32>
    %cst_5 = arith.constant 0.000000e+00 : f32
    %6 = vector.broadcast %cst_5 : f32 to vector<32x128xf32>
    %7 = arith.maximumf %5, %6 : vector<32x128xf32>
    %c0_6 = arith.constant 0 : index
    %c0_7 = arith.constant 0 : index
    %8 = vector.load %arg3[%c0_6, %c0_7] : memref<32x128xf32, #tpu.memory_space<vmem>>, vector<32x128xf32>
    tpu.vector_store %arg3[%c0_6, %c0_7], %7 {strides = array<i32>} : memref<32x128xf32, #tpu.memory_space<vmem>>, vector<32x128xf32>,
    return
  }
}

module attributes {stable_mosaic.version = 11 : i64} {
  func.func @_conv_gemm_t_kernel(%arg0: memref<32x512xbf16, #tpu.memory_space<vmem>>, %arg1: memref<512x32xbf16, #tpu.memory_space<vmem>>, %arg2: memref<32x1xf32, #tpu.memory_space<vmem>>, %arg3: memref<32x32xf32, #tpu.memory_space<vmem>>) attributes {dimension_semantics = [], scalar_prefetch = 0 : i64, scratch_operands = 0 : i64, tpu.core_type = #tpu.core_type<tc>} {
    %c0 = arith.constant 0 : index
    %c0_0 = arith.constant 0 : index
    %0 = vector.load %arg0[%c0, %c0_0] : memref<32x512xbf16, #tpu.memory_space<vmem>>, vector<32x512xbf16>
    %c0_1 = arith.constant 0 : index
    %c0_2 = arith.constant 0 : index
    %1 = vector.load %arg1[%c0_1, %c0_2] : memref<512x32xbf16, #tpu.memory_space<vmem>>, vector<512x32xbf16>
    %cst = arith.constant dense<0.000000e+00> : vector<32x32xf32>
    %2 = tpu.matmul %0, %1, %cst {dimension_numbers = #tpu.dot_dimension_numbers<[1], [0], [0], [1], [0, 0, 1, 1], [], []>} : vector<32x512xbf16>, vector<512x32xbf16>, vector<32x32xf32> -> vector<32x32xf32>
    %c0_3 = arith.constant 0 : index
    %c0_4 = arith.constant 0 : index
    %3 = vector.load %arg2[%c0_3, %c0_4] : memref<32x1xf32, #tpu.memory_space<vmem>>, vector<32x1xf32>
    %4 = vector.broadcast %3 : vector<32x1xf32> to vector<32x32xf32>
    %5 = arith.addf %2, %4 : vector<32x32xf32>
    %cst_5 = arith.constant 0.000000e+00 : f32
    %6 = vector.broadcast %cst_5 : f32 to vector<32x32xf32>
    %7 = arith.maximumf %5, %6 : vector<32x32xf32>
    %c0_6 = arith.constant 0 : index
    %c0_7 = arith.constant 0 : index
    %8 = vector.load %arg3[%c0_6, %c0_7] : memref<32x32xf32, #tpu.memory_space<vmem>>, vector<32x32xf32>
    tpu.vector_store %arg3[%c0_6, %c0_7], %7 {strides = array<i32>} : memref<32x32xf32, #tpu.memory_space<vmem>>, vector<32x32xf32>,
    return
  }
}

module attributes {stable_mosaic.version = 11 : i64} {
  func.func @_latent_kernel(%arg0: memref<2x512xf32, #tpu.memory_space<vmem>>, %arg1: memref<2x8xf32, #tpu.memory_space<vmem>>, %arg2: memref<512x128xf32, #tpu.memory_space<vmem>>, %arg3: memref<1x128xf32, #tpu.memory_space<vmem>>, %arg4: memref<128x8xf32, #tpu.memory_space<vmem>>, %arg5: memref<1x8xf32, #tpu.memory_space<vmem>>, %arg6: memref<128x8xf32, #tpu.memory_space<vmem>>, %arg7: memref<1x8xf32, #tpu.memory_space<vmem>>, %arg8: memref<8x128xf32, #tpu.memory_space<vmem>>, %arg9: memref<1x128xf32, #tpu.memory_space<vmem>>, %arg10: memref<128x512xf32, #tpu.memory_space<vmem>>, %arg11: memref<1x512xf32, #tpu.memory_space<vmem>>, %arg12: memref<2x512xf32, #tpu.memory_space<vmem>>, %arg13: memref<2x8xf32, #tpu.memory_space<vmem>>, %arg14: memref<2x8xf32, #tpu.memory_space<vmem>>) attributes {dimension_semantics = [], scalar_prefetch = 0 : i64, scratch_operands = 0 : i64, tpu.core_type = #tpu.core_type<tc>} {
    %c0 = arith.constant 0 : index
    %c0_0 = arith.constant 0 : index
    %0 = vector.load %arg0[%c0, %c0_0] : memref<2x512xf32, #tpu.memory_space<vmem>>, vector<2x512xf32>
    %c0_1 = arith.constant 0 : index
    %c0_2 = arith.constant 0 : index
    %1 = vector.load %arg2[%c0_1, %c0_2] : memref<512x128xf32, #tpu.memory_space<vmem>>, vector<512x128xf32>
    %cst = arith.constant dense<0.000000e+00> : vector<2x128xf32>
    %2 = tpu.matmul %0, %1, %cst {dimension_numbers = #tpu.dot_dimension_numbers<[1], [0], [0], [1], [0, 0, 1, 1], [], []>} : vector<2x512xf32>, vector<512x128xf32>, vector<2x128xf32> -> vector<2x128xf32>
    %c0_3 = arith.constant 0 : index
    %c0_4 = arith.constant 0 : index
    %3 = vector.load %arg3[%c0_3, %c0_4] : memref<1x128xf32, #tpu.memory_space<vmem>>, vector<1x128xf32>
    %4 = vector.broadcast %3 : vector<1x128xf32> to vector<2x128xf32>
    %5 = arith.addf %2, %4 : vector<2x128xf32>
    %cst_5 = arith.constant 0.000000e+00 : f32
    %6 = vector.broadcast %cst_5 : f32 to vector<2x128xf32>
    %7 = arith.maximumf %5, %6 : vector<2x128xf32>
    %c0_6 = arith.constant 0 : index
    %c0_7 = arith.constant 0 : index
    %8 = vector.load %arg4[%c0_6, %c0_7] : memref<128x8xf32, #tpu.memory_space<vmem>>, vector<128x8xf32>
    %cst_8 = arith.constant dense<0.000000e+00> : vector<2x8xf32>
    %9 = tpu.matmul %7, %8, %cst_8 {dimension_numbers = #tpu.dot_dimension_numbers<[1], [0], [0], [1], [0, 0, 1, 1], [], []>} : vector<2x128xf32>, vector<128x8xf32>, vector<2x8xf32> -> vector<2x8xf32>
    %c0_9 = arith.constant 0 : index
    %c0_10 = arith.constant 0 : index
    %10 = vector.load %arg5[%c0_9, %c0_10] : memref<1x8xf32, #tpu.memory_space<vmem>>, vector<1x8xf32>
    %11 = vector.broadcast %10 : vector<1x8xf32> to vector<2x8xf32>
    %12 = arith.addf %9, %11 : vector<2x8xf32>
    %c0_11 = arith.constant 0 : index
    %c0_12 = arith.constant 0 : index
    %13 = vector.load %arg6[%c0_11, %c0_12] : memref<128x8xf32, #tpu.memory_space<vmem>>, vector<128x8xf32>
    %cst_13 = arith.constant dense<0.000000e+00> : vector<2x8xf32>
    %14 = tpu.matmul %7, %13, %cst_13 {dimension_numbers = #tpu.dot_dimension_numbers<[1], [0], [0], [1], [0, 0, 1, 1], [], []>} : vector<2x128xf32>, vector<128x8xf32>, vector<2x8xf32> -> vector<2x8xf32>
    %c0_14 = arith.constant 0 : index
    %c0_15 = arith.constant 0 : index
    %15 = vector.load %arg7[%c0_14, %c0_15] : memref<1x8xf32, #tpu.memory_space<vmem>>, vector<1x8xf32>
    %16 = vector.broadcast %15 : vector<1x8xf32> to vector<2x8xf32>
    %17 = arith.addf %14, %16 : vector<2x8xf32>
    %c0_16 = arith.constant 0 : index
    %c0_17 = arith.constant 0 : index
    %18 = vector.load %arg13[%c0_16, %c0_17] : memref<2x8xf32, #tpu.memory_space<vmem>>, vector<2x8xf32>
    tpu.vector_store %arg13[%c0_16, %c0_17], %12 {strides = array<i32>} : memref<2x8xf32, #tpu.memory_space<vmem>>, vector<2x8xf32>,
    %c0_18 = arith.constant 0 : index
    %c0_19 = arith.constant 0 : index
    %19 = vector.load %arg14[%c0_18, %c0_19] : memref<2x8xf32, #tpu.memory_space<vmem>>, vector<2x8xf32>
    tpu.vector_store %arg14[%c0_18, %c0_19], %17 {strides = array<i32>} : memref<2x8xf32, #tpu.memory_space<vmem>>, vector<2x8xf32>,
    %cst_20 = arith.constant 5.000000e-01 : f32
    %20 = vector.broadcast %cst_20 : f32 to vector<2x8xf32>
    %21 = arith.mulf %20, %17 : vector<2x8xf32>
    %22 = math.exp %21 : vector<2x8xf32>
    %c0_21 = arith.constant 0 : index
    %c0_22 = arith.constant 0 : index
    %23 = vector.load %arg1[%c0_21, %c0_22] : memref<2x8xf32, #tpu.memory_space<vmem>>, vector<2x8xf32>
    %24 = arith.mulf %22, %23 : vector<2x8xf32>
    %25 = arith.addf %12, %24 : vector<2x8xf32>
    %c0_23 = arith.constant 0 : index
    %c0_24 = arith.constant 0 : index
    %26 = vector.load %arg8[%c0_23, %c0_24] : memref<8x128xf32, #tpu.memory_space<vmem>>, vector<8x128xf32>
    %cst_25 = arith.constant dense<0.000000e+00> : vector<2x128xf32>
    %27 = tpu.matmul %25, %26, %cst_25 {dimension_numbers = #tpu.dot_dimension_numbers<[1], [0], [0], [1], [0, 0, 1, 1], [], []>} : vector<2x8xf32>, vector<8x128xf32>, vector<2x128xf32> -> vector<2x128xf32>
    %c0_26 = arith.constant 0 : index
    %c0_27 = arith.constant 0 : index
    %28 = vector.load %arg9[%c0_26, %c0_27] : memref<1x128xf32, #tpu.memory_space<vmem>>, vector<1x128xf32>
    %29 = vector.broadcast %28 : vector<1x128xf32> to vector<2x128xf32>
    %30 = arith.addf %27, %29 : vector<2x128xf32>
    %cst_28 = arith.constant 0.000000e+00 : f32
    %31 = vector.broadcast %cst_28 : f32 to vector<2x128xf32>
    %32 = arith.maximumf %30, %31 : vector<2x128xf32>
    %c0_29 = arith.constant 0 : index
    %c0_30 = arith.constant 0 : index
    %33 = vector.load %arg10[%c0_29, %c0_30] : memref<128x512xf32, #tpu.memory_space<vmem>>, vector<128x512xf32>
    %cst_31 = arith.constant dense<0.000000e+00> : vector<2x512xf32>
    %34 = tpu.matmul %32, %33, %cst_31 {dimension_numbers = #tpu.dot_dimension_numbers<[1], [0], [0], [1], [0, 0, 1, 1], [], []>} : vector<2x128xf32>, vector<128x512xf32>, vector<2x512xf32> -> vector<2x512xf32>
    %c0_32 = arith.constant 0 : index
    %c0_33 = arith.constant 0 : index
    %35 = vector.load %arg11[%c0_32, %c0_33] : memref<1x512xf32, #tpu.memory_space<vmem>>, vector<1x512xf32>
    %36 = vector.broadcast %35 : vector<1x512xf32> to vector<2x512xf32>
    %37 = arith.addf %34, %36 : vector<2x512xf32>
    %cst_34 = arith.constant 0.000000e+00 : f32
    %38 = vector.broadcast %cst_34 : f32 to vector<2x512xf32>
    %39 = arith.maximumf %37, %38 : vector<2x512xf32>
    %c0_35 = arith.constant 0 : index
    %c0_36 = arith.constant 0 : index
    %40 = vector.load %arg12[%c0_35, %c0_36] : memref<2x512xf32, #tpu.memory_space<vmem>>, vector<2x512xf32>
    tpu.vector_store %arg12[%c0_35, %c0_36], %39 {strides = array<i32>} : memref<2x512xf32, #tpu.memory_space<vmem>>, vector<2x512xf32>,
    return
  }
}

module attributes {stable_mosaic.version = 11 : i64} {
  func.func @_conv_gemm_t_kernel(%arg0: memref<32x512xbf16, #tpu.memory_space<vmem>>, %arg1: memref<512x128xbf16, #tpu.memory_space<vmem>>, %arg2: memref<32x1xf32, #tpu.memory_space<vmem>>, %arg3: memref<32x128xf32, #tpu.memory_space<vmem>>) attributes {dimension_semantics = [], scalar_prefetch = 0 : i64, scratch_operands = 0 : i64, tpu.core_type = #tpu.core_type<tc>} {
    %c0 = arith.constant 0 : index
    %c0_0 = arith.constant 0 : index
    %0 = vector.load %arg0[%c0, %c0_0] : memref<32x512xbf16, #tpu.memory_space<vmem>>, vector<32x512xbf16>
    %c0_1 = arith.constant 0 : index
    %c0_2 = arith.constant 0 : index
    %1 = vector.load %arg1[%c0_1, %c0_2] : memref<512x128xbf16, #tpu.memory_space<vmem>>, vector<512x128xbf16>
    %cst = arith.constant dense<0.000000e+00> : vector<32x128xf32>
    %2 = tpu.matmul %0, %1, %cst {dimension_numbers = #tpu.dot_dimension_numbers<[1], [0], [0], [1], [0, 0, 1, 1], [], []>} : vector<32x512xbf16>, vector<512x128xbf16>, vector<32x128xf32> -> vector<32x128xf32>
    %c0_3 = arith.constant 0 : index
    %c0_4 = arith.constant 0 : index
    %3 = vector.load %arg2[%c0_3, %c0_4] : memref<32x1xf32, #tpu.memory_space<vmem>>, vector<32x1xf32>
    %4 = vector.broadcast %3 : vector<32x1xf32> to vector<32x128xf32>
    %5 = arith.addf %2, %4 : vector<32x128xf32>
    %cst_5 = arith.constant 0.000000e+00 : f32
    %6 = vector.broadcast %cst_5 : f32 to vector<32x128xf32>
    %7 = arith.maximumf %5, %6 : vector<32x128xf32>
    %c0_6 = arith.constant 0 : index
    %c0_7 = arith.constant 0 : index
    %8 = vector.load %arg3[%c0_6, %c0_7] : memref<32x128xf32, #tpu.memory_space<vmem>>, vector<32x128xf32>
    tpu.vector_store %arg3[%c0_6, %c0_7], %7 {strides = array<i32>} : memref<32x128xf32, #tpu.memory_space<vmem>>, vector<32x128xf32>,
    return
  }
}

module attributes {stable_mosaic.version = 11 : i64} {
  func.func @_conv_gemm_t_kernel(%arg0: memref<4x512xbf16, #tpu.memory_space<vmem>>, %arg1: memref<512x512xbf16, #tpu.memory_space<vmem>>, %arg2: memref<4x1xf32, #tpu.memory_space<vmem>>, %arg3: memref<4x512xf32, #tpu.memory_space<vmem>>) attributes {dimension_semantics = [], scalar_prefetch = 0 : i64, scratch_operands = 0 : i64, tpu.core_type = #tpu.core_type<tc>} {
    %c0 = arith.constant 0 : index
    %c0_0 = arith.constant 0 : index
    %0 = vector.load %arg0[%c0, %c0_0] : memref<4x512xbf16, #tpu.memory_space<vmem>>, vector<4x512xbf16>
    %c0_1 = arith.constant 0 : index
    %c0_2 = arith.constant 0 : index
    %1 = vector.load %arg1[%c0_1, %c0_2] : memref<512x512xbf16, #tpu.memory_space<vmem>>, vector<512x512xbf16>
    %cst = arith.constant dense<0.000000e+00> : vector<4x512xf32>
    %2 = tpu.matmul %0, %1, %cst {dimension_numbers = #tpu.dot_dimension_numbers<[1], [0], [0], [1], [0, 0, 1, 1], [], []>} : vector<4x512xbf16>, vector<512x512xbf16>, vector<4x512xf32> -> vector<4x512xf32>
    %c0_3 = arith.constant 0 : index
    %c0_4 = arith.constant 0 : index
    %3 = vector.load %arg2[%c0_3, %c0_4] : memref<4x1xf32, #tpu.memory_space<vmem>>, vector<4x1xf32>
    %4 = vector.broadcast %3 : vector<4x1xf32> to vector<4x512xf32>
    %5 = arith.addf %2, %4 : vector<4x512xf32>
    %6 = arith.negf %5 : vector<4x512xf32>
    %7 = math.exp %6 : vector<4x512xf32>
    %cst_5 = arith.constant 1.000000e+00 : f32
    %8 = vector.broadcast %cst_5 : f32 to vector<4x512xf32>
    %9 = arith.addf %8, %7 : vector<4x512xf32>
    %10 = arith.divf %8, %9 : vector<4x512xf32>
    %c0_6 = arith.constant 0 : index
    %c0_7 = arith.constant 0 : index
    %11 = vector.load %arg3[%c0_6, %c0_7] : memref<4x512xf32, #tpu.memory_space<vmem>>, vector<4x512xf32>
    tpu.vector_store %arg3[%c0_6, %c0_7], %10 {strides = array<i32>} : memref<4x512xf32, #tpu.memory_space<vmem>>, vector<4x512xf32>,
    return
  }
}

</mosaic_0001>

<bundles_post_ra>
// kernel: betacvae_forward.5
= control target key start
LH: loop header
LB: loop body
LE: loop exit
PB: predicated region body
PF: predicated region fallthrough
CT: control target
= control target key end

     0   :  { %v188_v1 = vmov 0   ;;  %vm85_vm0 = vcmask 523264   ;;  %s253_s1 = inlined_call_operand.vmem [shape: bf16[64,128], index: 1, kind: input, shape index: {}]   ;;  %s254_s0 = inlined_call_operand.vmem [shape: bf16[32,64], index: 0, kind: input, shape index: {}]   ;;  %s255_s2 = inlined_call_operand.vmem [shape: f32[32,1], index: 2, kind: input, shape index: {}]   ;;  %s256_s3 = inlined_call_operand.vmem [shape: f32[32,128], index: 3, kind: output, shape index: {}]  }
   0x1   :  { %v182_v0 = vld [vmem:[%s253_s1] sm:$0xff]   ;;  %181 = vset.pattern.permute.xlu1 %v188_v1  ;;  %180 = vset.pattern.permute.xlu0 %v188_v1  ;;  %v183_v2 = vld [vmem:[%s253_s1 + $0x8] sm:$0xff]   ;;  %v184_v3 = vld [vmem:[%s253_s1 + $0x10] sm:$0xff]  }
   0x2   :  { %167 = vmatprep.subr.bf16.mxu0 %v182_v0  ;;  %v186_v4 = vld [vmem:[%s254_s0] sm:$0xff]   ;;  %v29_v5 = vld [vmem:[%s255_s2 + $0x10] sm:$0xff]  ;;  %v185_v7 = vld [vmem:[%s253_s1 + $0x18] sm:$0xff]  }
   0x3   :  { %168 = vmatpush3.bf16.msra.mxu0 %v182_v0  ;;  %175 = vmatprep.mubr.msk.bf16.mxu0 %vm85_vm0, %v186_v4  ;;  %v27_v6 = vld [vmem:[%s255_s2] sm:$0xff]  ;;  %v30_v8 = vld [vmem:[%s255_s2 + $0x18] sm:$0xff]  ;;  %v28_v9 = vld [vmem:[%s255_s2 + $0x8] sm:$0xff] }
   0x4   :  { %169 = vmatprep.subr.bf16.mxu0 %v183_v2  ;;  %43 = vperm.xlu1 %181, %v29_v5   ;;  %v187_v10 = vld [vmem:[%s254_s0 + $0x8] sm:$0xff]  }
   0x5   :  { %33 = vperm.xlu0 %180, %v27_v6  }
   0x7   :  { %170 = vmatpush3.bf16.msra.mxu0 %v183_v2 }
   0x8   :  { %171 = vmatprep.subr.bf16.mxu0 %v184_v3  ;;  %48 = vperm.xlu1 %181, %v30_v8  }
   0x9   :  { %38 = vperm.xlu0 %180, %v28_v9  }
   0xb   :  { %172 = vmatpush3.bf16.msra.mxu0 %v184_v3 }
   0xc   :  { %173 = vmatprep.subr.bf16.mxu0 %v185_v7 }
   0xf   :  { %174 = vmatpush3.bf16.msra.mxu0 %v185_v7 }
  0x12   :  { %176 = vmatmul.mubr.msk.bf16.vlgmr.msra.gmra.mrb[0].mxu0 %vm85_vm0, %v187_v10 }
  0x83   :  { %v44_v11 = vpop.permute.xlu1 %43 }
  0x84   :  { %v34_v12 = vpop.permute.xlu0 %33 }
  0x87   :  { %v49_v16 = vpop.permute.xlu1 %48 }
  0x88   :  { %v39_v19 = vpop.permute.xlu0 %38 }
  0xe5   :  { %v177_v13 = vpop.f32.mrb[0].mxu0 }
  0xe6   :  { %v135_v14 = vadd.f32 %v177_v13, %v44_v11  ;;  %v126_v15 = vpop.f32.mrb[1].mxu0 }
  0xe7   :  { %v127_v17 = vadd.f32 %v126_v15, %v34_v12  ;;  %v178_v18 = vpop.f32.mrb[2].mxu0 }
  0xe8   :  { %v143_v20 = vmax.f32 %v135_v14, 0.0  ;;  %v138_v21 = vadd.f32 %v178_v18, %v49_v16  ;;  %v129_v22 = vpop.f32.mrb[3].mxu0 }
  0xe9   :  { %v141_v23 = vmax.f32 %v127_v17, 0.0  ;;  %v130_v24 = vadd.f32 %v129_v22, %v39_v19 }
  0xea   :  { %147 = vst [vmem:[%s256_s3 + $0x10] sm:$0xff] %v143_v20  ;;  %v144_v25 = vmax.f32 %v138_v21, 0.0 }
  0xeb   :  { %145 = vst [vmem:[%s256_s3] sm:$0xff] %v141_v23  ;;  %v142_v26 = vmax.f32 %v130_v24, 0.0 }
  0xec   :  { %148 = vst [vmem:[%s256_s3 + $0x18] sm:$0xff] %v144_v25 }
  0xed   :  { %146 = vst [vmem:[%s256_s3 + $0x8] sm:$0xff] %v142_v26 }

// kernel: betacvae_forward.6
= control target key start
LH: loop header
LB: loop body
LE: loop exit
PB: predicated region body
PF: predicated region fallthrough
CT: control target
= control target key end

     0   :  { %v597_v1 = vmov 0   ;;  %vm445_vm0 = vcmask 261120   ;;  %s766_s1 = inlined_call_operand.vmem [shape: bf16[512,32], index: 1, kind: input, shape index: {}]   ;;  %s767_s0 = inlined_call_operand.vmem [shape: bf16[32,512], index: 0, kind: input, shape index: {}]   ;;  %s768_s2 = inlined_call_operand.vmem [shape: f32[32,1], index: 2, kind: input, shape index: {}]   ;;  %s769_s3 = inlined_call_operand.vmem [shape: f32[32,32], index: 3, kind: output, shape index: {}]  }
   0x1   :  { %v553_v0 = vld [vmem:[%s766_s1 + $0x40] sm:$0xff]   ;;  %551 = vset.pattern.permute.xlu0 %v597_v1  ;;  %552 = vset.pattern.permute.xlu1 %v597_v1  ;;  %v557_v5 = vld [vmem:[%s766_s1 + $0x48] sm:$0xff]   ;;  %v561_v9 = vld [vmem:[%s766_s1 + $0x50] sm:$0xff]  }
   0x2   :  { %v554_v2 = vld [vmem:[%s766_s1 + $0xc0] sm:$0xff]   ;;  %494 = vmatprep.subr.bf16.mxu0 %v553_v0  ;;  %v558_v6 = vld [vmem:[%s766_s1 + $0xc8] sm:$0xff]   ;;  %v562_v10 = vld [vmem:[%s766_s1 + $0xd0] sm:$0xff]  }
   0x3   :  { %v555_v3 = vld [vmem:[%s766_s1] sm:$0xff]   ;;  %522 = vmatprep.subr.bf16.mxu1 %v554_v2  ;;  %v559_v7 = vld [vmem:[%s766_s1 + $0x8] sm:$0xff]   ;;  %v563_v11 = vld [vmem:[%s766_s1 + $0x10] sm:$0xff]  }
   0x4   :  { %v556_v4 = vld [vmem:[%s766_s1 + $0x80] sm:$0xff]   ;;  %495 = vmatpush3.bf16.msra.mxu0 %v555_v3  ;;  %v560_v8 = vld [vmem:[%s766_s1 + $0x88] sm:$0xff]   ;;  %v564_v12 = vld [vmem:[%s766_s1 + $0x90] sm:$0xff]  }
   0x5   :  { %523 = vmatpush3.bf16.msra.mxu1 %v556_v4  ;;  %496 = vmatprep.subr.bf16.mxu0 %v557_v5  ;;  %v565_v13 = vld [vmem:[%s766_s1 + $0x58] sm:$0xff]   ;;  %v569_v17 = vld [vmem:[%s766_s1 + $0x60] sm:$0xff]   ;;  %v573_v21 = vld [vmem:[%s766_s1 + $0x68] sm:$0xff]  }
   0x6   :  { %524 = vmatprep.subr.bf16.mxu1 %v558_v6  ;;  %v566_v14 = vld [vmem:[%s766_s1 + $0xd8] sm:$0xff]   ;;  %v570_v18 = vld [vmem:[%s766_s1 + $0xe0] sm:$0xff]   ;;  %v574_v22 = vld [vmem:[%s766_s1 + $0xe8] sm:$0xff]  }
   0x7   :  { %v567_v15 = vld [vmem:[%s766_s1 + $0x18] sm:$0xff]   ;;  %v571_v19 = vld [vmem:[%s766_s1 + $0x20] sm:$0xff]   ;;  %v575_v23 = vld [vmem:[%s766_s1 + $0x28] sm:$0xff]  }
   0x8   :  { %497 = vmatpush3.bf16.msra.mxu0 %v559_v7  ;;  %v568_v16 = vld [vmem:[%s766_s1 + $0x98] sm:$0xff]   ;;  %v572_v20 = vld [vmem:[%s766_s1 + $0xa0] sm:$0xff]   ;;  %v576_v24 = vld [vmem:[%s766_s1 + $0xa8] sm:$0xff]  }
   0x9   :  { %525 = vmatpush3.bf16.msra.mxu1 %v560_v8  ;;  %498 = vmatprep.subr.bf16.mxu0 %v561_v9  ;;  %v577_v25 = vld [vmem:[%s766_s1 + $0x70] sm:$0xff]   ;;  %v581_v29 = vld [vmem:[%s766_s1 + $0x78] sm:$0xff]   ;;  %v87_v39 = vld [vmem:[%s768_s2] sm:$0xff] }
   0xa   :  { %526 = vmatprep.subr.bf16.mxu1 %v562_v10  ;;  %v578_v26 = vld [vmem:[%s766_s1 + $0xf0] sm:$0xff]   ;;  %v582_v30 = vld [vmem:[%s766_s1 + $0xf8] sm:$0xff]   ;;  %93 = vperm.xlu0 %551, %v87_v39   ;;  %v88_v41 = vld [vmem:[%s768_s2 + $0x8] sm:$0xff] }
   0xb   :  { %v579_v27 = vld [vmem:[%s766_s1 + $0x30] sm:$0xff]   ;;  %v583_v31 = vld [vmem:[%s766_s1 + $0x38] sm:$0xff]  }
   0xc   :  { %499 = vmatpush3.bf16.msra.mxu0 %v563_v11  ;;  %v580_v28 = vld [vmem:[%s766_s1 + $0xb0] sm:$0xff]   ;;  %v584_v32 = vld [vmem:[%s766_s1 + $0xb8] sm:$0xff]  }
   0xd   :  { %527 = vmatpush3.bf16.msra.mxu1 %v564_v12  ;;  %500 = vmatprep.subr.bf16.mxu0 %v565_v13  ;;  %v585_v33 = vld [vmem:[%s767_s0] ss:$16 sps:$4 sm:$0xff]   ;;  %v587_v34 = vld [vmem:[%s767_s0 + $0x4] ss:$16 sps:$4 sm:$0xff]   ;;  %v588_v35 = vld [vmem:[%s767_s0 + $0x8] ss:$16 sps:$4 sm:$0xff]  }
   0xe   :  { %528 = vmatprep.subr.bf16.mxu1 %v566_v14  ;;  %v590_v36 = vld [vmem:[%s767_s0 + $0xc] ss:$16 sps:$4 sm:$0xff]   ;;  %375 = vmatprep.mubr.bf16.mxu0 %v587_v34  ;;  %v591_v37 = vld [vmem:[%s767_s0 + $0x24] ss:$16 sps:$4 sm:$0xff]   ;;  %v595_v42 = vld [vmem:[%s767_s0 + $0x20] ss:$16 sps:$4 sm:$0xff]  }
   0xf   :  { %424 = vmatprep.mubr.bf16.mxu1 %v590_v36  ;;  %v593_v38 = vld [vmem:[%s767_s0 + $0x2c] ss:$16 sps:$4 sm:$0xff]   ;;  %v89_v40 = vld [vmem:[%s768_s2 + $0x10] sm:$0xff]  ;;  %v596_v44 = vld [vmem:[%s767_s0 + $0x28] ss:$16 sps:$4 sm:$0xff]   ;;  %98 = vperm.xlu0 %551, %v88_v41  }
  0x10   :  { %501 = vmatpush3.bf16.msra.mxu0 %v567_v15  ;;  %103 = vperm.xlu1 %552, %v89_v40   ;;  %v90_v43 = vld [vmem:[%s768_s2 + $0x18] sm:$0xff] }
  0x11   :  { %529 = vmatpush3.bf16.msra.mxu1 %v568_v16  ;;  %502 = vmatprep.subr.bf16.mxu0 %v569_v17 }
  0x12   :  { %530 = vmatprep.subr.bf16.mxu1 %v570_v18 }
  0x14   :  { %503 = vmatpush3.bf16.msra.mxu0 %v571_v19  ;;  %108 = vperm.xlu1 %552, %v90_v43  }
  0x15   :  { %531 = vmatpush3.bf16.msra.mxu1 %v572_v20  ;;  %504 = vmatprep.subr.bf16.mxu0 %v573_v21 }
  0x16   :  { %532 = vmatprep.subr.bf16.mxu1 %v574_v22 }
  0x18   :  { %505 = vmatpush3.bf16.msra.mxu0 %v575_v23 }
  0x19   :  { %533 = vmatpush3.bf16.msra.mxu1 %v576_v24  ;;  %506 = vmatprep.subr.bf16.mxu0 %v577_v25 }
  0x1a   :  { %534 = vmatprep.subr.bf16.mxu1 %v578_v26 }
  0x1c   :  { %507 = vmatpush3.bf16.msra.mxu0 %v579_v27 }
  0x1d   :  { %535 = vmatpush3.bf16.msra.mxu1 %v580_v28  ;;  %508 = vmatprep.subr.bf16.mxu0 %v581_v29 }
  0x1e   :  { %536 = vmatprep.subr.bf16.mxu1 %v582_v30 }
  0x20   :  { %509 = vmatpush3.bf16.msra.mxu0 %v583_v31 }
  0x21   :  { %537 = vmatpush3.bf16.msra.mxu1 %v584_v32 }
  0x23   :  { %376 = vmatmul.mubr.bf16.vlgmr.msra.gmra.mrb[0].mxu0 %v585_v33 }
  0x24   :  { %425 = vmatmul.mubr.bf16.vlgmr.msra.gmra.mrb[0].mxu1 %v588_v35  ;;  %383 = vmatprep.mubr.bf16.mxu0 %v591_v37 }
  0x25   :  { %432 = vmatprep.mubr.bf16.mxu1 %v593_v38 }
  0x2b   :  { %384 = vmatmul.mubr.bf16.gmra.mrb[4].mxu0 %v595_v42 }
  0x2c   :  { %433 = vmatmul.mubr.bf16.gmra.mrb[4].mxu1 %v596_v44 }
  0x89   :  { %v94_v45 = vpop.permute.xlu0 %93 }
  0x8e   :  { %v99_v47 = vpop.permute.xlu0 %98 }
  0x8f   :  { %v104_v62 = vpop.permute.xlu1 %103 }
  0x93   :  { %v109_v14 = vpop.permute.xlu1 %108 }
  0xf6   :  { %v510_v46 = vpop.f32.mrb[0].mxu0 }
  0xf7   :  { %v538_v48 = vpop.f32.mrb[0].mxu1  ;;  %v511_v49 = vpop.f32.mrb[1].mxu0 }
  0xf8   :  { %v512_v50 = vadd.f32 %v511_v49, %v510_v46  ;;  %v539_v51 = vpop.f32.mrb[1].mxu1  ;;  %v513_v52 = vpop.f32.mrb[2].mxu0 }
  0xf9   :  { %v540_v53 = vadd.f32 %v539_v51, %v538_v48  ;;  %v541_v54 = vpop.f32.mrb[2].mxu1  ;;  %v514_v55 = vpop.f32.mrb[3].mxu0 }
  0xfa   :  { %v378_v56 = vadd.f32 %v512_v50, %v94_v45  ;;  %v515_v57 = vadd.f32 %v514_v55, %v513_v52  ;;  %v542_v58 = vpop.f32.mrb[3].mxu1 }
  0xfb   :  { %v543_v59 = vadd.f32 %v542_v58, %v541_v54 }
  0xfc   :  { %v427_v60 = vadd.f32 %v540_v53, %v378_v56  ;;  %v381_v61 = vadd.f32 %v515_v57, %v99_v47 }
  0xfe   :  { %v441_v63 = vmax.f32 %v427_v60, 0.0  ;;  %v430_v0 = vadd.f32 %v543_v59, %v381_v61  ;;  %v516_v1 = vpop.f32.mrb[4].mxu0 }
  0xff   :  { %v544_v2 = vpop.f32.mrb[4].mxu1  ;;  %v517_v3 = vpop.f32.mrb[5].mxu0 }
 0x100   :  { %446 = vst.msk [vmem:[%s769_s3] sm:$0xff] %vm445_vm0, %v441_v63  ;;  %v442_v4 = vmax.f32 %v430_v0, 0.0  ;;  %v518_v5 = vadd.f32 %v517_v3, %v516_v1  ;;  %v545_v6 = vpop.f32.mrb[5].mxu1  ;;  %v519_v7 = vpop.f32.mrb[6].mxu0 }
 0x101   :  { %v546_v8 = vadd.f32 %v545_v6, %v544_v2  ;;  %v547_v9 = vpop.f32.mrb[6].mxu1  ;;  %v520_v10 = vpop.f32.mrb[7].mxu0 }
 0x102   :  { %447 = vst.msk [vmem:[%s769_s3 + $0x8] sm:$0xff] %vm445_vm0, %v442_v4  ;;  %v386_v11 = vadd.f32 %v518_v5, %v104_v62  ;;  %v521_v12 = vadd.f32 %v520_v10, %v519_v7  ;;  %v548_v13 = vpop.f32.mrb[7].mxu1 }
 0x103   :  { %v549_v15 = vadd.f32 %v548_v13, %v547_v9 }
 0x104   :  { %v435_v16 = vadd.f32 %v546_v8, %v386_v11  ;;  %v389_v17 = vadd.f32 %v521_v12, %v109_v14 }
 0x106   :  { %v443_v18 = vmax.f32 %v435_v16, 0.0  ;;  %v438_v19 = vadd.f32 %v549_v15, %v389_v17 }
 0x108   :  { %448 = vst.msk [vmem:[%s769_s3 + $0x10] sm:$0xff] %vm445_vm0, %v443_v18  ;;  %v444_v20 = vmax.f32 %v438_v19, 0.0 }
 0x10a   :  { %449 = vst.msk [vmem:[%s769_s3 + $0x18] sm:$0xff] %vm445_vm0, %v444_v20 }

// kernel: betacvae_forward.7
= control target key start
LH: loop header
LB: loop body
LE: loop exit
PB: predicated region body
PF: predicated region fallthrough
CT: control target
= control target key end

     0   :  { %20 = vsyncpa [#allocation3], 0  ;;  %v1265_v47 = vmov 1983009808   ;;  %v123_v49 = vlaneseq  ;;  %s1915_s0 = inlined_call_operand.vmem [shape: f32[2,512], index: 0, kind: input, shape index: {}]   ;;  %s1916_s1 = inlined_call_operand.vmem [shape: f32[2,8], index: 1, kind: input, shape index: {}]   ;;  %s1917_s2 = inlined_call_operand.vmem [shape: f32[512,128], index: 2, kind: input, shape index: {}]   ;;  %s1918_s3 = inlined_call_operand.vmem [shape: f32[1,128], index: 3, kind: input, shape index: {}]   ;;  %s1919_s4 = inlined_call_operand.vmem [shape: f32[128,8], index: 4, kind: input, shape index: {}]   ;;  %s1920_s5 = inlined_call_operand.vmem [shape: f32[1,8], index: 5, kind: input, shape index: {}]   ;;  %s1921_s6 = inlined_call_operand.vmem [shape: f32[128,8], index: 6, kind: input, shape index: {}]   ;;  %s1922_s7 = inlined_call_operand.vmem [shape: f32[1,8], index: 7, kind: input, shape index: {}]   ;;  %s1923_s8 = inlined_call_operand.vmem [shape: f32[8,128], index: 8, kind: input, shape index: {}]   ;;  %s1924_s9 = inlined_call_operand.vmem [shape: f32[1,128], index: 9, kind: input, shape index: {}]   ;;  %s1925_s10 = inlined_call_operand.vmem [shape: f32[128,512], index: 10, kind: input, shape index: {}]   ;;  %s1926_s11 = inlined_call_operand.vmem [shape: f32[1,512], index: 11, kind: input, shape index: {}]   ;;  %s1927_s12 = inlined_call_operand.vmem [shape: f32[2,512], index: 12, kind: output, shape index: {0}]   ;;  %s1928_s13 = inlined_call_operand.hbm [shape: f32[2,8], index: 13, kind: output, shape index: {1}]   ;;  %s1929_s14 = inlined_call_operand.hbm [shape: f32[2,8], index: 14, kind: output, shape index: {2}]  }
   0x1   :  { %v63_v0 = vld [vmem:[%s1917_s2 + $0x80] sm:$0xff]  ;;  %v64_v1 = vld [vmem:[%s1917_s2 + $0x88] sm:$0xff]  ;;  %v65_v11 = vld [vmem:[%s1917_s2 + $0x90] sm:$0xff]  ;;  %v121_v48 = vunpack.c.l.s4 %v1265_v47 }
   0x2   :  { %v47_v2 = vld [vmem:[%s1917_s2] sm:$0xff]  ;;  %v1032_v3 = vpack.c.bf16 %v64_v1, %v63_v0  ;;  %v48_v4 = vld [vmem:[%s1917_s2 + $0x8] sm:$0xff]  ;;  %v66_v13 = vld [vmem:[%s1917_s2 + $0x98] sm:$0xff]  ;;  %v1472_v0 = vshrl.u32 %v123_v49, 7 }
   0x3   :  { %v95_v5 = vld [vmem:[%s1917_s2 + $0x180] sm:$0xff]  ;;  %v96_v6 = vld [vmem:[%s1917_s2 + $0x188] sm:$0xff]  ;;  %v1034_v7 = vpack.c.bf16 %v48_v4, %v47_v2  ;;  %v49_v14 = vld [vmem:[%s1917_s2 + $0x10] sm:$0xff]  ;;  %v1036_v16 = vpack.c.bf16 %v66_v13, %v65_v11  ;;  %v122_v63 = vunpack.c.0.s8 %v121_v48 }
   0x4   :  { %v1064_v8 = vpack.c.bf16 %v96_v6, %v95_v5  ;;  %v79_v9 = vld [vmem:[%s1917_s2 + $0x100] sm:$0xff]  ;;  %v80_v10 = vld [vmem:[%s1917_s2 + $0x108] sm:$0xff]  ;;  %1033 = vmatprep.subr.bf16.mxu0 %v1032_v3  ;;  %v50_v15 = vld [vmem:[%s1917_s2 + $0x18] sm:$0xff] }
   0x5   :  { %v1066_v12 = vpack.c.bf16 %v80_v10, %v79_v9  ;;  %1035 = vmatpush3.bf16.msra.mxu0 %v1034_v7  ;;  %v1038_v17 = vpack.c.bf16 %v50_v15, %v49_v14  ;;  %v97_v18 = vld [vmem:[%s1917_s2 + $0x190] sm:$0xff]  ;;  %v98_v19 = vld [vmem:[%s1917_s2 + $0x198] sm:$0xff]  ;;  %v67_v23 = vld [vmem:[%s1917_s2 + $0xa0] sm:$0xff]  ;;  %v1499_v13 = vsub.s32 %v122_v63, %v1472_v0 }
   0x6   :  { %1065 = vmatprep.subr.bf16.mxu1 %v1064_v8  ;;  %v81_v20 = vld [vmem:[%s1917_s2 + $0x110] sm:$0xff]  ;;  %v1068_v21 = vpack.c.bf16 %v98_v19, %v97_v18  ;;  %v82_v22 = vld [vmem:[%s1917_s2 + $0x118] sm:$0xff]  ;;  %v68_v24 = vld [vmem:[%s1917_s2 + $0xa8] sm:$0xff]  ;;  %1037 = vmatprep.subr.bf16.mxu0 %v1036_v16 }
   0x7   :  { %1067 = vmatpush3.bf16.msra.mxu1 %v1066_v12  ;;  %v1070_v25 = vpack.c.bf16 %v82_v22, %v81_v20  ;;  %v1040_v26 = vpack.c.bf16 %v68_v24, %v67_v23  ;;  %v51_v27 = vld [vmem:[%s1917_s2 + $0x20] sm:$0xff]  ;;  %v52_v28 = vld [vmem:[%s1917_s2 + $0x28] sm:$0xff]  ;;  %v69_v35 = vld [vmem:[%s1917_s2 + $0xb0] sm:$0xff] }
   0x8   :  { %v99_v29 = vld [vmem:[%s1917_s2 + $0x1a0] sm:$0xff]  ;;  %1069 = vmatprep.subr.bf16.mxu1 %v1068_v21  ;;  %v100_v30 = vld [vmem:[%s1917_s2 + $0x1a8] sm:$0xff]  ;;  %v1042_v33 = vpack.c.bf16 %v52_v28, %v51_v27  ;;  %v70_v36 = vld [vmem:[%s1917_s2 + $0xb8] sm:$0xff] }
   0x9   :  { %v83_v31 = vld [vmem:[%s1917_s2 + $0x120] sm:$0xff]  ;;  %v84_v32 = vld [vmem:[%s1917_s2 + $0x128] sm:$0xff]  ;;  %1039 = vmatpush3.bf16.msra.mxu0 %v1038_v17  ;;  %v1072_v34 = vpack.c.bf16 %v100_v30, %v99_v29  ;;  %v53_v37 = vld [vmem:[%s1917_s2 + $0x30] sm:$0xff]  ;;  %v1044_v39 = vpack.c.bf16 %v70_v36, %v69_v35 }
   0xa   :  { %1041 = vmatprep.subr.bf16.mxu0 %v1040_v26  ;;  %v1074_v38 = vpack.c.bf16 %v84_v32, %v83_v31  ;;  %v54_v40 = vld [vmem:[%s1917_s2 + $0x38] sm:$0xff]  ;;  %v101_v41 = vld [vmem:[%s1917_s2 + $0x1b0] sm:$0xff]  ;;  %v71_v46 = vld [vmem:[%s1917_s2 + $0xc0] sm:$0xff] }
   0xb   :  { %1071 = vmatpush3.bf16.msra.mxu1 %v1070_v25  ;;  %v102_v42 = vld [vmem:[%s1917_s2 + $0x1b8] sm:$0xff]  ;;  %v85_v44 = vld [vmem:[%s1917_s2 + $0x130] sm:$0xff]  ;;  %v72_v50 = vld [vmem:[%s1917_s2 + $0xc8] sm:$0xff]  ;;  %v1046_v51 = vpack.c.bf16 %v54_v40, %v53_v37 }
   0xc   :  { %1073 = vmatprep.subr.bf16.mxu1 %v1072_v34  ;;  %v1076_v43 = vpack.c.bf16 %v102_v42, %v101_v41  ;;  %v86_v45 = vld [vmem:[%s1917_s2 + $0x138] sm:$0xff]  ;;  %v103_v52 = vld [vmem:[%s1917_s2 + $0x1c0] sm:$0xff]  ;;  %v104_v53 = vld [vmem:[%s1917_s2 + $0x1c8] sm:$0xff]  ;;  %v1048_v55 = vpack.c.bf16 %v72_v50, %v71_v46 }
   0xd   :  { %1043 = vmatpush3.bf16.msra.mxu0 %v1042_v33  ;;  %v1078_v54 = vpack.c.bf16 %v86_v45, %v85_v44  ;;  %v55_v56 = vld [vmem:[%s1917_s2 + $0x40] sm:$0xff]  ;;  %v56_v57 = vld [vmem:[%s1917_s2 + $0x48] sm:$0xff]  ;;  %v1080_v59 = vpack.c.bf16 %v104_v53, %v103_v52  ;;  %v73_v61 = vld [vmem:[%s1917_s2 + $0xd0] sm:$0xff] }
   0xe   :  { %1045 = vmatprep.subr.bf16.mxu0 %v1044_v39  ;;  %v87_v58 = vld [vmem:[%s1917_s2 + $0x140] sm:$0xff]  ;;  %v88_v60 = vld [vmem:[%s1917_s2 + $0x148] sm:$0xff]  ;;  %v74_v62 = vld [vmem:[%s1917_s2 + $0xd8] sm:$0xff]  ;;  %v1050_v3 = vpack.c.bf16 %v56_v57, %v55_v56 }
   0xf   :  { %1075 = vmatpush3.bf16.msra.mxu1 %v1074_v38  ;;  %v105_v1 = vld [vmem:[%s1917_s2 + $0x1d0] sm:$0xff]  ;;  %v106_v2 = vld [vmem:[%s1917_s2 + $0x1d8] sm:$0xff]  ;;  %v1082_v4 = vpack.c.bf16 %v88_v60, %v87_v58  ;;  %v1052_v5 = vpack.c.bf16 %v74_v62, %v73_v61  ;;  %v75_v11 = vld [vmem:[%s1917_s2 + $0xe0] sm:$0xff] }
  0x10   :  { %1077 = vmatprep.subr.bf16.mxu1 %v1076_v43  ;;  %v57_v6 = vld [vmem:[%s1917_s2 + $0x50] sm:$0xff]  ;;  %v58_v7 = vld [vmem:[%s1917_s2 + $0x58] sm:$0xff]  ;;  %v1084_v9 = vpack.c.bf16 %v106_v2, %v105_v1  ;;  %v76_v12 = vld [vmem:[%s1917_s2 + $0xe8] sm:$0xff] }
  0x11   :  { %1047 = vmatpush3.bf16.msra.mxu0 %v1046_v51  ;;  %v89_v8 = vld [vmem:[%s1917_s2 + $0x150] sm:$0xff]  ;;  %v90_v10 = vld [vmem:[%s1917_s2 + $0x158] sm:$0xff]  ;;  %v107_v14 = vld [vmem:[%s1917_s2 + $0x1e0] sm:$0xff]  ;;  %v1054_v16 = vpack.c.bf16 %v58_v7, %v57_v6  ;;  %v1056_v19 = vpack.c.bf16 %v76_v12, %v75_v11 }
  0x12   :  { %1049 = vmatprep.subr.bf16.mxu0 %v1048_v55  ;;  %v108_v15 = vld [vmem:[%s1917_s2 + $0x1e8] sm:$0xff]  ;;  %v59_v17 = vld [vmem:[%s1917_s2 + $0x60] sm:$0xff]  ;;  %v1086_v18 = vpack.c.bf16 %v90_v10, %v89_v8  ;;  %v77_v25 = vld [vmem:[%s1917_s2 + $0xf0] sm:$0xff] }
  0x13   :  { %1079 = vmatpush3.bf16.msra.mxu1 %v1078_v54  ;;  %v60_v20 = vld [vmem:[%s1917_s2 + $0x68] sm:$0xff]  ;;  %v91_v21 = vld [vmem:[%s1917_s2 + $0x160] sm:$0xff]  ;;  %v1088_v23 = vpack.c.bf16 %v108_v15, %v107_v14  ;;  %v78_v26 = vld [vmem:[%s1917_s2 + $0xf8] sm:$0xff] }
  0x14   :  { %1081 = vmatprep.subr.bf16.mxu1 %v1080_v59  ;;  %v46_v22 = vld [vmem:[%s1915_s0] sm:$0xff]  ;;  %v92_v24 = vld [vmem:[%s1917_s2 + $0x168] sm:$0xff]  ;;  %v109_v29 = vld [vmem:[%s1917_s2 + $0x1f0] sm:$0xff]  ;;  %v1058_v31 = vpack.c.bf16 %v60_v20, %v59_v17  ;;  %v1060_v35 = vpack.c.bf16 %v78_v26, %v77_v25 }
  0x15   :  { %1051 = vmatpush3.bf16.msra.mxu0 %v1050_v3  ;;  %v126_v27 = vrot.slane %v46_v22, %v1499_v13  ;;  %v119_v28 = vcombine.high %v46_v22, %v46_v22  ;;  %v110_v30 = vld [vmem:[%s1917_s2 + $0x1f8] sm:$0xff]  ;;  %v1090_v34 = vpack.c.bf16 %v92_v24, %v91_v21  ;;  %v61_v36 = vld [vmem:[%s1917_s2 + $0x70] sm:$0xff]  ;;  %v281_v44 = vld [vmem:[%s1919_s4] sm:$0xff] }
  0x16   :  { %1053 = vmatprep.subr.bf16.mxu0 %v1052_v5  ;;  %v62_v37 = vld [vmem:[%s1917_s2 + $0x78] sm:$0xff]  ;;  %v1092_v38 = vpack.c.bf16 %v110_v30, %v109_v29  ;;  %v93_v39 = vld [vmem:[%s1917_s2 + $0x170] sm:$0xff]  ;;  %v282_v45 = vld [vmem:[%s1919_s4 + $0x8] sm:$0xff] }
  0x17   :  { %1083 = vmatpush3.bf16.msra.mxu1 %v1082_v4  ;;  %v134_v32 = vcombine.high %v126_v27, %v126_v27  ;;  %v133_v33 = vrot.slane %v119_v28, %v1499_v13  ;;  %v94_v40 = vld [vmem:[%s1917_s2 + $0x178] sm:$0xff]  ;;  %v1062_v42 = vpack.c.bf16 %v62_v37, %v61_v36 }
  0x18   :  { %1085 = vmatprep.subr.bf16.mxu1 %v1084_v9  ;;  %v1094_v43 = vpack.c.bf16 %v94_v40, %v93_v39 }
  0x19   :  { %1055 = vmatpush3.bf16.msra.mxu0 %v1054_v16  ;;  %204 = vmatprep.mubr.f32.mxu0 %v134_v32  ;;  %v135_v41 = vcombine.high %v133_v33, %v133_v33 }
  0x1a   :  { %1057 = vmatprep.subr.bf16.mxu0 %v1056_v19 }
  0x1b   :  { %1087 = vmatpush3.bf16.msra.mxu1 %v1086_v18  ;;  %274 = vmatprep.mubr.f32.mxu1 %v135_v41 }
  0x1c   :  { %1089 = vmatprep.subr.bf16.mxu1 %v1088_v23 }
  0x1d   :  { %1059 = vmatpush3.bf16.msra.mxu0 %v1058_v31 }
  0x1e   :  { %1061 = vmatprep.subr.bf16.mxu0 %v1060_v35 }
  0x1f   :  { %1091 = vmatpush3.bf16.msra.mxu1 %v1090_v34 }
  0x20   :  { %21 = vsyncpa [#allocation5], 0  ;;  %1093 = vmatprep.subr.bf16.mxu1 %v1092_v38  ;;  %v374_v46 = vld [vmem:[%s1921_s6] sm:$0xff]  ;;  %v375_v47 = vld [vmem:[%s1921_s6 + $0x8] sm:$0xff]  ;;  %v1097_v48 = vpack.c.bf16 %v282_v45, %v281_v44  ;;  %v1266_v49 = vmov 0.0|0.0   ;;  %vm1267_vm0 = vmmov 0  }
  0x21   :  { %1063 = vmatpush3.bf16.msra.mxu0 %v1062_v42  ;;  %v1121_v50 = vpack.c.bf16 %v375_v47, %v374_v46  ;;  %v283_v51 = vld [vmem:[%s1919_s4 + $0x10] sm:$0xff]  ;;  %v284_v52 = vld [vmem:[%s1919_s4 + $0x18] sm:$0xff]  ;;  %v285_v57 = vld [vmem:[%s1919_s4 + $0x20] sm:$0xff]  ;;  %v1268_v31 = vmov 0.0   ;;  %vm467_vm1 = vcmask 58368   ;;  %vm484_vm2 = vcmask 64512  }
  0x22   :  { %1096 = vmatprep.subr.bf16.mxu0 %v1266_v49  ;;  %v376_v53 = vld [vmem:[%s1921_s6 + $0x10] sm:$0xff]  ;;  %v377_v54 = vld [vmem:[%s1921_s6 + $0x18] sm:$0xff]  ;;  %v1100_v55 = vpack.c.bf16 %v284_v52, %v283_v51  ;;  %v286_v58 = vld [vmem:[%s1919_s4 + $0x28] sm:$0xff]  ;;  %s1269_s21 = smov [#allocation2]   ;;  %s1270_s22 = smov [#allocation4]  }
  0x23   :  { %1095 = vmatpush3.bf16.msra.mxu1 %v1094_v43  ;;  %v1124_v56 = vpack.c.bf16 %v377_v54, %v376_v53  ;;  %v378_v59 = vld [vmem:[%s1921_s6 + $0x20] sm:$0xff]  ;;  %v379_v60 = vld [vmem:[%s1921_s6 + $0x28] sm:$0xff]  ;;  %v1103_v61 = vpack.c.bf16 %v286_v58, %v285_v57  ;;  %v287_v63 = vld [vmem:[%s1919_s4 + $0x30] sm:$0xff] }
  0x24   :  { %1120 = vmatprep.subr.bf16.mxu1 %v1266_v49  ;;  %205 = vmatmul.mubr.f32.vlgmr.msra.gmra.mrb[0].mxu0 %v126_v27  ;;  %v1127_v62 = vpack.c.bf16 %v379_v60, %v378_v59  ;;  %v288_v1 = vld [vmem:[%s1919_s4 + $0x38] sm:$0xff]  ;;  %v380_v2 = vld [vmem:[%s1921_s6 + $0x30] sm:$0xff]  ;;  %v289_v6 = vld [vmem:[%s1919_s4 + $0x40] sm:$0xff] }
  0x25   :  { %1098 = vmatpush3.bf16.msra.mxu0 %v1097_v48  ;;  %v381_v3 = vld [vmem:[%s1921_s6 + $0x38] sm:$0xff]  ;;  %v1106_v4 = vpack.c.bf16 %v288_v1, %v287_v63  ;;  %v290_v7 = vld [vmem:[%s1919_s4 + $0x48] sm:$0xff]  ;;  %v382_v8 = vld [vmem:[%s1921_s6 + $0x40] sm:$0xff]  ;;  %989 = vmatprep.mubr.msk.f32.mxu0 %vm1267_vm0, %v1268_v31 }
  0x26   :  { %275 = vmatmul.mubr.f32.vlgmr.msra.gmra.mrb[0].mxu1 %v133_v33  ;;  %1099 = vmatprep.subr.bf16.mxu0 %v1266_v49  ;;  %v1130_v5 = vpack.c.bf16 %v381_v3, %v380_v2  ;;  %v383_v9 = vld [vmem:[%s1921_s6 + $0x48] sm:$0xff]  ;;  %v1109_v10 = vpack.c.bf16 %v290_v7, %v289_v6  ;;  %v291_v12 = vld [vmem:[%s1919_s4 + $0x50] sm:$0xff]  ;;  %v292_v14 = vld [vmem:[%s1919_s4 + $0x58] sm:$0xff] }
  0x27   :  { %1122 = vmatpush3.bf16.msra.mxu1 %v1121_v50  ;;  %v1133_v11 = vpack.c.bf16 %v383_v9, %v382_v8  ;;  %v384_v15 = vld [vmem:[%s1921_s6 + $0x50] sm:$0xff]  ;;  %v385_v16 = vld [vmem:[%s1921_s6 + $0x58] sm:$0xff]  ;;  %v1112_v17 = vpack.c.bf16 %v292_v14, %v291_v12  ;;  %v293_v19 = vld [vmem:[%s1919_s4 + $0x60] sm:$0xff]  ;;  %1024 = vmatprep.mubr.msk.f32.mxu1 %vm1267_vm0, %v1268_v31 }
  0x28   :  { %1123 = vmatprep.subr.bf16.mxu1 %v1266_v49  ;;  %v1136_v18 = vpack.c.bf16 %v385_v16, %v384_v15  ;;  %v294_v20 = vld [vmem:[%s1919_s4 + $0x68] sm:$0xff]  ;;  %v386_v22 = vld [vmem:[%s1921_s6 + $0x60] sm:$0xff]  ;;  %v295_v25 = vld [vmem:[%s1919_s4 + $0x70] sm:$0xff] }
  0x29   :  { %1101 = vmatpush3.bf16.msra.mxu0 %v1100_v55  ;;  %v1115_v21 = vpack.c.bf16 %v294_v20, %v293_v19  ;;  %v387_v23 = vld [vmem:[%s1921_s6 + $0x68] sm:$0xff]  ;;  %v296_v26 = vld [vmem:[%s1919_s4 + $0x78] sm:$0xff]  ;;  %v388_v27 = vld [vmem:[%s1921_s6 + $0x70] sm:$0xff]  ;;  %s822_s4 = sshll.u32 %s1269_s21, 4  ;;  %s823_s4 = int_to_ptr.vmem [resolvable:$true] %s822_s4 }
  0x2a   :  { %1102 = vmatprep.subr.bf16.mxu0 %v1266_v49  ;;  %v1139_v24 = vpack.c.bf16 %v387_v23, %v386_v22  ;;  %v1118_v28 = vpack.c.bf16 %v296_v26, %v295_v25  ;;  %v389_v29 = vld [vmem:[%s1921_s6 + $0x78] sm:$0xff]  ;;  %v846_v33 = vld [vmem:[%s1918_s3] ss:$0 sm:$0xff]  ;;  %v560_v43 = vld [vmem:[%s1925_s10 + $0x8] sm:$0xff]  ;;  %s832_s6 = sshll.u32 %s1270_s22, 4  ;;  %p1222_p1 = scmp.lt.s32.totalorder %s823_s4, %s823_s4  ;;  %s833_s6 = int_to_ptr.vmem [resolvable:$true] %s832_s6 }
  0x2b   :  { %1125 = vmatpush3.bf16.msra.mxu1 %v1124_v56  ;;  %v1142_v30 = vpack.c.bf16 %v389_v29, %v388_v27  ;;  %v476_v42 = vld [vmem:[%s1923_s8] sm:$0xff]  ;;  %v564_v44 = vld [vmem:[%s1925_s10 + $0x28] sm:$0xff]  ;;  %v562_v45 = vld [vmem:[%s1925_s10 + $0x18] sm:$0xff] }
  0x2c   :  { %1126 = vmatprep.subr.bf16.mxu1 %v1266_v49  ;;  %v1144_v46 = vpack.c.bf16 %v564_v44, %v560_v43  ;;  %v566_v47 = vld [vmem:[%s1925_s10 + $0x38] sm:$0xff]  ;;  %v559_v48 = vld [vmem:[%s1925_s10] sm:$0xff]  ;;  %v568_v52 = vld [vmem:[%s1925_s10 + $0x48] sm:$0xff] }
  0x2d   :  { %1104 = vmatpush3.bf16.msra.mxu0 %v1103_v61  ;;  %v1176_v50 = vpack.c.bf16 %v566_v47, %v562_v45  ;;  %v572_v53 = vld [vmem:[%s1925_s10 + $0x68] sm:$0xff]  ;;  %v567_v55 = vld [vmem:[%s1925_s10 + $0x40] sm:$0xff]  ;;  %v569_v47 = vld [vmem:[%s1925_s10 + $0x50] sm:$0xff] }
  0x2e   :  { %1105 = vmatprep.subr.bf16.mxu0 %v1266_v49  ;;  %v1148_v54 = vpack.c.bf16 %v572_v53, %v568_v52  ;;  %v571_v56 = vld [vmem:[%s1925_s10 + $0x60] sm:$0xff]  ;;  %v576_v58 = vld [vmem:[%s1925_s10 + $0x88] sm:$0xff]  ;;  %v577_v53 = vld [vmem:[%s1925_s10 + $0x90] sm:$0xff] }
  0x2f   :  { %1128 = vmatpush3.bf16.msra.mxu1 %v1127_v62  ;;  %v1150_v57 = vpack.c.bf16 %v571_v56, %v567_v55  ;;  %v580_v59 = vld [vmem:[%s1925_s10 + $0xa8] sm:$0xff]  ;;  %v575_v61 = vld [vmem:[%s1925_s10 + $0x80] sm:$0xff]  ;;  %v586_v55 = vld [vmem:[%s1925_s10 + $0xd8] sm:$0xff] }
  0x30   :  { %1129 = vmatprep.subr.bf16.mxu1 %v1266_v49  ;;  %v1152_v60 = vpack.c.bf16 %v580_v59, %v576_v58  ;;  %v579_v62 = vld [vmem:[%s1925_s10 + $0xa0] sm:$0xff]  ;;  %v584_v1 = vld [vmem:[%s1925_s10 + $0xc8] sm:$0xff]  ;;  %v590_v56 = vld [vmem:[%s1925_s10 + $0xf8] sm:$0xff] }
  0x31   :  { %1107 = vmatpush3.bf16.msra.mxu0 %v1106_v4  ;;  %v1154_v63 = vpack.c.bf16 %v579_v62, %v575_v61  ;;  %v588_v2 = vld [vmem:[%s1925_s10 + $0xe8] sm:$0xff]  ;;  %v583_v4 = vld [vmem:[%s1925_s10 + $0xc0] sm:$0xff]  ;;  %v585_v58 = vld [vmem:[%s1925_s10 + $0xd0] sm:$0xff] }
  0x32   :  { %1108 = vmatprep.subr.bf16.mxu0 %v1266_v49  ;;  %v1156_v3 = vpack.c.bf16 %v588_v2, %v584_v1  ;;  %v592_v7 = vld [vmem:[%s1925_s10 + $0x108] sm:$0xff]  ;;  %v607_v23 = vld [vmem:[%s1925_s10 + $0x180] sm:$0xff]  ;;  %v589_v59 = vld [vmem:[%s1925_s10 + $0xf0] sm:$0xff] }
  0x33   :  { %1131 = vmatpush3.bf16.msra.mxu1 %v1130_v5  ;;  %v587_v5 = vld [vmem:[%s1925_s10 + $0xe0] sm:$0xff]  ;;  %v596_v8 = vld [vmem:[%s1925_s10 + $0x128] sm:$0xff]  ;;  %v598_v61 = vld [vmem:[%s1925_s10 + $0x138] sm:$0xff]  ;;  %v1190_v62 = vpack.c.bf16 %v589_v59, %v585_v58 }
  0x34   :  { %1132 = vmatprep.subr.bf16.mxu1 %v1266_v49  ;;  %v1158_v6 = vpack.c.bf16 %v587_v5, %v583_v4  ;;  %v1160_v9 = vpack.c.bf16 %v596_v8, %v592_v7  ;;  %v600_v14 = vld [vmem:[%s1925_s10 + $0x148] sm:$0xff]  ;;  %v847_v26 = vld [vmem:[%s1920_s5] ss:$0 sm:$0xff]  ;;  %v593_v1 = vld [vmem:[%s1925_s10 + $0x110] sm:$0xff] }
  0x35   :  { %1110 = vmatpush3.bf16.msra.mxu0 %v1109_v10  ;;  %v591_v10 = vld [vmem:[%s1925_s10 + $0x100] sm:$0xff]  ;;  %v604_v15 = vld [vmem:[%s1925_s10 + $0x168] sm:$0xff]  ;;  %v597_v2 = vld [vmem:[%s1925_s10 + $0x130] sm:$0xff] }
  0x36   :  { %1111 = vmatprep.subr.bf16.mxu0 %v1266_v49  ;;  %v1164_v16 = vpack.c.bf16 %v604_v15, %v600_v14  ;;  %v608_v20 = vld [vmem:[%s1925_s10 + $0x188] sm:$0xff]  ;;  %v848_v27 = vld [vmem:[%s1922_s7] ss:$0 sm:$0xff]  ;;  %v606_v4 = vld [vmem:[%s1925_s10 + $0x178] sm:$0xff]  ;;  %v1194_v5 = vpack.c.bf16 %v597_v2, %v593_v1 }
  0x37   :  { %1134 = vmatpush3.bf16.msra.mxu1 %v1133_v11  ;;  %v595_v11 = vld [vmem:[%s1925_s10 + $0x120] sm:$0xff]  ;;  %v601_v7 = vld [vmem:[%s1925_s10 + $0x150] sm:$0xff] }
  0x38   :  { %1135 = vmatprep.subr.bf16.mxu1 %v1266_v49  ;;  %v1162_v12 = vpack.c.bf16 %v595_v11, %v591_v10  ;;  %v605_v8 = vld [vmem:[%s1925_s10 + $0x170] sm:$0xff]  ;;  %v614_v10 = vld [vmem:[%s1925_s10 + $0x1b8] sm:$0xff] }
  0x39   :  { %1113 = vmatpush3.bf16.msra.mxu0 %v1112_v17  ;;  %v599_v17 = vld [vmem:[%s1925_s10 + $0x140] sm:$0xff]  ;;  %v1198_v11 = vpack.c.bf16 %v605_v8, %v601_v7  ;;  %v609_v14 = vld [vmem:[%s1925_s10 + $0x190] sm:$0xff] }
  0x3a   :  { %1114 = vmatprep.subr.bf16.mxu0 %v1266_v49  ;;  %v613_v15 = vld [vmem:[%s1925_s10 + $0x1b0] sm:$0xff] }
  0x3b   :  { %1137 = vmatpush3.bf16.msra.mxu1 %v1136_v18  ;;  %v603_v18 = vld [vmem:[%s1925_s10 + $0x160] sm:$0xff] }
  0x3c   :  { %1138 = vmatprep.subr.bf16.mxu1 %v1266_v49  ;;  %v1166_v19 = vpack.c.bf16 %v603_v18, %v599_v17  ;;  %v616_v17 = vld [vmem:[%s1925_s10 + $0x1c8] sm:$0xff] }
  0x3d   :  { %1116 = vmatpush3.bf16.msra.mxu0 %v1115_v21  ;;  %v612_v21 = vld [vmem:[%s1925_s10 + $0x1a8] sm:$0xff] }
  0x3e   :  { %1117 = vmatprep.subr.bf16.mxu0 %v1266_v49  ;;  %v1168_v22 = vpack.c.bf16 %v612_v21, %v608_v20  ;;  %v620_v18 = vld [vmem:[%s1925_s10 + $0x1e8] sm:$0xff]  ;;  %v622_v21 = vld [vmem:[%s1925_s10 + $0x1f8] sm:$0xff] }
  0x3f   :  { %1140 = vmatpush3.bf16.msra.mxu1 %v1139_v24  ;;  %v611_v24 = vld [vmem:[%s1925_s10 + $0x1a0] sm:$0xff]  ;;  %v1172_v20 = vpack.c.bf16 %v620_v18, %v616_v17 }
  0x40   :  { %1141 = vmatprep.subr.bf16.mxu1 %v1266_v49  ;;  %v563_v49 = vld [vmem:[%s1925_s10 + $0x20] sm:$0xff]  ;;  %v1170_v25 = vpack.c.bf16 %v611_v24, %v607_v23 }
  0x41   :  { %1119 = vmatpush3.bf16.msra.mxu0 %v1118_v28  ;;  %v1146_v51 = vpack.c.bf16 %v563_v49, %v559_v48  ;;  %v573_v48 = vld [vmem:[%s1925_s10 + $0x70] sm:$0xff]  ;;  %v578_v49 = vld [vmem:[%s1925_s10 + $0x98] sm:$0xff]  ;;  %v619_v23 = vld [vmem:[%s1925_s10 + $0x1e0] sm:$0xff] }
  0x42   :  { %1027 = vmatprep.subr.mxu0 %v1268_v31 }
  0x43   :  { %1143 = vmatpush3.bf16.msra.mxu1 %v1142_v30 }
  0x44   :  { %1145 = vmatprep.subr.bf16.mxu1 %v1144_v46 }
  0xf7   :  { %v883_v32 = vpop.f32.mrb[0].mxu0 }
  0xf8   :  { %v884_v34 = vpop.f32.mrb[1].mxu0 }
  0xf9   :  { %v918_v35 = vpop.f32.mrb[0].mxu1  ;;  %v885_v36 = vadd.f32 %v884_v34, %v883_v32 }
  0xfa   :  { %v919_v37 = vpop.f32.mrb[1].mxu1 }
  0xfb   :  { %v920_v38 = vadd.f32 %v919_v37, %v918_v35  ;;  %v207_v39 = vadd.f32 %v885_v36, %v846_v33  ;;  %v473_v37 = vld [vmem:[%s1916_s1] sm:$0x3] }
  0xfd   :  { %v277_v40 = vadd.f32 %v920_v38, %v207_v39  ;;  %v561_v38 = vld [vmem:[%s1925_s10 + $0x10] sm:$0xff] }
  0xfe   :  { %v565_v39 = vld [vmem:[%s1925_s10 + $0x30] sm:$0xff] }
  0xff   :  { %v280_v41 = vmax.f32 %v277_v40, 0.0  ;;  %v1178_v44 = vpack.c.bf16 %v565_v39, %v561_v38 }
 0x101   :  { %990 = vmatmul.mubr.f32.vlgmr.msra.gmra.mrb[2].mxu0 %v280_v41  ;;  %1025 = vmatmul.mubr.f32.vlgmr.msra.gmra.mrb[2].mxu1 %v280_v41  ;;  %v570_v41 = vld [vmem:[%s1925_s10 + $0x58] sm:$0xff] }
 0x102   :  { %1029 = vmatprep.mubr.msk.f32.mxu0 %vm1267_vm0, %v1268_v31  ;;  %709 = vmatprep.mubr.f32.mxu1 %v1268_v31 }
 0x103   :  { %1028 = vmatpush3.msra.mxu0 %v476_v42  ;;  %1147 = vmatpush1.bf16.msra.mxu1 %v1146_v51  ;;  %v574_v42 = vld [vmem:[%s1925_s10 + $0x78] sm:$0xff]  ;;  %v1182_v51 = vpack.c.bf16 %v573_v48, %v569_v47 }
 0x104   :  { %1177 = vmatprep.subr.bf16.mxu0 %v1176_v50  ;;  %1149 = vmatprep.subr.bf16.mxu1 %v1148_v54  ;;  %v1180_v46 = vpack.c.bf16 %v574_v42, %v570_v41  ;;  %v582_v50 = vld [vmem:[%s1925_s10 + $0xb8] sm:$0xff]  ;;  %v581_v54 = vld [vmem:[%s1925_s10 + $0xb0] sm:$0xff] }
 0x105   :  { %v1184_v52 = vpack.c.bf16 %v582_v50, %v578_v49 }
 0x107   :  { %1151 = vmatpush1.bf16.msra.mxu1 %v1150_v57  ;;  %v1188_v57 = vpack.c.bf16 %v590_v56, %v586_v55 }
 0x108   :  { %1153 = vmatprep.subr.bf16.mxu1 %v1152_v60  ;;  %v594_v60 = vld [vmem:[%s1925_s10 + $0x118] sm:$0xff] }
 0x10b   :  { %1155 = vmatpush1.bf16.msra.mxu1 %v1154_v63  ;;  %v1192_v63 = vpack.c.bf16 %v598_v61, %v594_v60 }
 0x10c   :  { %1157 = vmatprep.subr.bf16.mxu1 %v1156_v3  ;;  %v602_v3 = vld [vmem:[%s1925_s10 + $0x158] sm:$0xff] }
 0x10f   :  { %1159 = vmatpush1.bf16.msra.mxu1 %v1158_v6  ;;  %v1196_v6 = vpack.c.bf16 %v606_v4, %v602_v3 }
 0x110   :  { %1161 = vmatprep.subr.bf16.mxu1 %v1160_v9  ;;  %v610_v9 = vld [vmem:[%s1925_s10 + $0x198] sm:$0xff] }
 0x113   :  { %1163 = vmatpush1.bf16.msra.mxu1 %v1162_v12  ;;  %v1200_v12 = vpack.c.bf16 %v614_v10, %v610_v9 }
 0x114   :  { %1165 = vmatprep.subr.bf16.mxu1 %v1164_v16  ;;  %v1202_v16 = vpack.c.bf16 %v613_v15, %v609_v14 }
 0x117   :  { %1167 = vmatpush1.bf16.msra.mxu1 %v1166_v19  ;;  %v618_v19 = vld [vmem:[%s1925_s10 + $0x1d8] sm:$0xff] }
 0x118   :  { %1169 = vmatprep.subr.bf16.mxu1 %v1168_v22  ;;  %v615_v22 = vld [vmem:[%s1925_s10 + $0x1c0] sm:$0xff]  ;;  %v1204_v24 = vpack.c.bf16 %v622_v21, %v618_v19 }
 0x11b   :  { %1171 = vmatpush1.bf16.msra.mxu1 %v1170_v25  ;;  %v1174_v25 = vpack.c.bf16 %v619_v23, %v615_v22 }
 0x11c   :  { %1173 = vmatprep.subr.bf16.mxu1 %v1172_v20 }
 0x11f   :  { %1175 = vmatpush1.bf16.msra.mxu1 %v1174_v25 }
 0x1d4   :  { %v370_v28 = vpop.f32.mrb[2].mxu0  ;;  %v463_v29 = vpop.f32.mrb[2].mxu1 }
 0x1d5   :  { %v371_v30 = vadd.f32 %v847_v26, %v370_v28  ;;  %v464_v32 = vadd.f32 %v848_v27, %v463_v29  ;;  %v991_v33 = vpop.f32.mrb[3].mxu0  ;;  %v1026_v34 = vpop.f32.mrb[3].mxu1  ;;  %v617_v26 = vld [vmem:[%s1925_s10 + $0x1d0] sm:$0xff]  ;;  %v849_v29 = vld [vmem:[%s1924_s9] ss:$0 sm:$0xff] }
 0x1d6   :  { %v621_v27 = vld [vmem:[%s1925_s10 + $0x1f0] sm:$0xff]  ;;  %s1217_s10 = scalar_lea.vmem %s823_s4, 32 }
 0x1d7   :  { %v470_v35 = vmul.f32 0.5, %v464_v32  ;;  %468 = vst.msk [vmem:[#allocation2] sm:$0x3] %vm467_vm1, %v371_v30  ;;  %469 = vst.msk [vmem:[#allocation4] sm:$0x3] %vm467_vm1, %v464_v32  ;;  %v1206_v28 = vpack.c.bf16 %v621_v27, %v617_v26  ;;  %p1218_p0 = scmp.ne.s32.totalorder %s823_s4, %s1217_s10  ;;  %p1223_p2 = scmp.lt.s32.totalorder %s1217_s10, %s1217_s10 }
 0x1d9   :  { %v471_v36 = vmul.f32 1.442695, %v470_v35  ;;  %p1224_p3 = por %p1223_p2, %p1222_p1 }
 0x1db   :  { %1215 = vpow2.f32 %v471_v36  ;;  %p1225_p4 = pnand %p1224_p3, %p1218_p0 }
 0x1e5   :  { %v1216_v40 = vpop.eup %1215 }
 0x1e6   :  { %v474_v43 = vmul.f32 %v1216_v40, %v473_v37 }
 0x1e8   :  { %v475_v45 = vadd.f32 %v474_v43, %v371_v30 }
 0x1ea   :  { %1030 = vmatmul.mubr.msk.f32.vlgmr.msra.gmra.mrb[4].mxu0 %vm484_vm2, %v475_v45 }
 0x1eb   :  { %1179 = vmatpush1.bf16.msra.mxu0 %v1178_v44  ;;  %780 = vmatprep.mubr.f32.mxu0 %v1268_v31  ;;  %v1186_v31 = vpack.c.bf16 %v581_v54, %v577_v53 }
 0x1ec   :  { %1181 = vmatprep.subr.bf16.mxu0 %v1180_v46 }
 0x1ef   :  { %1183 = vmatpush1.bf16.msra.mxu0 %v1182_v51 }
 0x1f0   :  { %1185 = vmatprep.subr.bf16.mxu0 %v1184_v52 }
 0x1f3   :  { %1187 = vmatpush1.bf16.msra.mxu0 %v1186_v31 }
 0x1f4   :  { %1189 = vmatprep.subr.bf16.mxu0 %v1188_v57 }
 0x1f7   :  { %1191 = vmatpush1.bf16.msra.mxu0 %v1190_v62 }
 0x1f8   :  { %1193 = vmatprep.subr.bf16.mxu0 %v1192_v63 }
 0x1fb   :  { %1195 = vmatpush1.bf16.msra.mxu0 %v1194_v5 }
 0x1fc   :  { %1197 = vmatprep.subr.bf16.mxu0 %v1196_v6 }
 0x1ff   :  { %1199 = vmatpush1.bf16.msra.mxu0 %v1198_v11 }
 0x200   :  { %1201 = vmatprep.subr.bf16.mxu0 %v1200_v12 }
 0x203   :  { %1203 = vmatpush1.bf16.msra.mxu0 %v1202_v16 }
 0x204   :  { %1205 = vmatprep.subr.bf16.mxu0 %v1204_v24 }
 0x207   :  { %1207 = vmatpush1.bf16.msra.mxu0 %v1206_v28 }
 0x2bd   :  { %v554_v30 = vpop.f32.mrb[4].mxu0 }
 0x2be   :  { %v555_v32 = vadd.f32 %v849_v29, %v554_v30  ;;  %v1031_v33 = vpop.f32.mrb[5].mxu0 }
 0x2c0   :  { %v558_v34 = vmax.f32 %v555_v32, 0.0 }
 0x2c2   :  { %710 = vmatmul.mubr.f32.vlgmr.msra.gmra.mrb[4].mxu1 %v558_v34  ;;  %781 = vmatmul.mubr.f32.vlgmr.msra.gmra.mrb[6].mxu0 %v558_v34 }
 0x2c3   :  { %1228 = shalt.err (!%p1225_p4)
}
 0x2c4   :  { %s1229_s5 = scalar_lea.hbm %s1928_s13, 32 }
 0x2c5   :  { %p1230_p5 = scmp.ne.s32.totalorder %s1928_s13, %s1229_s5  ;;  %p1233_p6 = scmp.lt.u32.totalorder %s1229_s5, %s1928_s13 }
 0x2c7   :  { %p1235_p7 = pnand %p1233_p6, %p1230_p5 }
 0x2c9   :  { %1238 = shalt.err (!%p1235_p7)
}
 0x2ca   :  { %825 = dma.vmem_to_hbm [thread:$0]  %s823_s4, 32, %s1928_s13, [#allocation3]  }
 0x2cb   :  { %s1239_s28 = scalar_lea.vmem %s833_s6, 32  ;;  %p1244_p9 = scmp.lt.s32.totalorder %s833_s6, %s833_s6 }
 0x2cc   :  { %p1240_p8 = scmp.ne.s32.totalorder %s833_s6, %s1239_s28  ;;  %p1245_p10 = scmp.lt.s32.totalorder %s1239_s28, %s1239_s28 }
 0x2ce   :  { %p1246_p11 = por %p1245_p10, %p1244_p9 }
 0x2d0   :  { %p1247_p12 = pnand %p1246_p11, %p1240_p8 }
 0x2d2   :  { %1250 = shalt.err (!%p1247_p12)
}
 0x2d3   :  { %s1251_s30 = scalar_lea.hbm %s1929_s14, 32 }
 0x2d4   :  { %p1252_p13 = scmp.ne.s32.totalorder %s1929_s14, %s1251_s30  ;;  %p1255_p0 = scmp.lt.u32.totalorder %s1251_s30, %s1929_s14 }
 0x2d6   :  { %p1257_p1 = pnand %p1255_p0, %p1252_p13 }
 0x2d8   :  { %1260 = shalt.err (!%p1257_p1)
}
 0x2d9   :  { %835 = dma.vmem_to_hbm [thread:$0]  %s833_s6, 32, %s1929_s14, [#allocation5]   ;;  %v627_v35 = vsub.s32 0, %v1472_v0  ;;  %v635_v36 = vsub.s32 2, %v1472_v0  ;;  %v623_v37 = vld [vmem:[%s1926_s11] sm:$0xf] }
 0x2da   :  { %v631_v38 = vsub.s32 1, %v1472_v0  ;;  %v639_v39 = vsub.s32 3, %v1472_v0 }
 0x2db   :  { %v628_v40 = vrot.slane %v623_v37, %v627_v35  ;;  %v636_v41 = vrot.slane %v623_v37, %v635_v36 }
 0x2dc   :  { %v632_v42 = vrot.slane %v623_v37, %v631_v38  ;;  %v640_v43 = vrot.slane %v623_v37, %v639_v39 }
 0x395   :  { %v711_v44 = vpop.f32.mrb[4].mxu1  ;;  %v782_v45 = vpop.f32.mrb[6].mxu0 }
 0x396   :  { %v712_v46 = vadd.f32 %v711_v44, %v628_v40  ;;  %v783_v47 = vadd.f32 %v782_v45, %v636_v41  ;;  %v713_v48 = vpop.f32.mrb[5].mxu1  ;;  %v784_v49 = vpop.f32.mrb[7].mxu0 }
 0x397   :  { %v714_v50 = vadd.f32 %v713_v48, %v632_v42  ;;  %v785_v51 = vadd.f32 %v784_v49, %v640_v43 }
 0x398   :  { %v787_v52 = vmax.f32 %v712_v46, 0.0  ;;  %v789_v53 = vmax.f32 %v783_v47, 0.0 }
 0x399   :  { %v788_v54 = vmax.f32 %v714_v50, 0.0  ;;  %v790_v55 = vmax.f32 %v785_v51, 0.0 }
 0x39b   :  { %v795_v56 = vcombine.low %v787_v52, %v788_v54  ;;  %v796_v31 = vcombine.low %v789_v53, %v790_v55 }
 0x39d   :  { %v803_v0 = vrot.slane %v795_v56, %v1499_v13  ;;  %v810_v57 = vrot.slane %v796_v31, %v1499_v13 }
 0x39f   :  { %v811_v58 = vcombine.low %v803_v0, %v810_v57 }
 0x3a1   :  { %813 = vst [vmem:[%s1927_s12] sm:$0xff] %v811_v58 }
 0x3a2   :  { %1261 = dma.done.wait [#allocation3], 32  }
 0x3a3   :  { %1262 = vsyncadd [#allocation3], 4294967264 }
 0x3a4   :  { %1263 = dma.done.wait [#allocation5], 32  }
 0x3a5   :  { %1264 = vsyncadd [#allocation5], 4294967264 }
 0x3a6   :  { %844 = vsyncpa [#allocation3], 1 }
 0x3a7   :  { %845 = vsyncpa [#allocation5], 1 }

// kernel: betacvae_forward.8
= control target key start
LH: loop header
LB: loop body
LE: loop exit
PB: predicated region body
PF: predicated region fallthrough
CT: control target
= control target key end

     0   :  { %v596_v1 = vmov 0   ;;  %s761_s1 = inlined_call_operand.vmem [shape: bf16[512,128], index: 1, kind: input, shape index: {}]   ;;  %s762_s0 = inlined_call_operand.vmem [shape: bf16[32,512], index: 0, kind: input, shape index: {}]   ;;  %s763_s2 = inlined_call_operand.vmem [shape: f32[32,1], index: 2, kind: input, shape index: {}]   ;;  %s764_s3 = inlined_call_operand.vmem [shape: f32[32,128], index: 3, kind: output, shape index: {}]  }
   0x1   :  { %v552_v0 = vld [vmem:[%s761_s1 + $0x40] sm:$0xff]   ;;  %550 = vset.pattern.permute.xlu0 %v596_v1  ;;  %551 = vset.pattern.permute.xlu1 %v596_v1  ;;  %v556_v5 = vld [vmem:[%s761_s1 + $0x48] sm:$0xff]   ;;  %v560_v9 = vld [vmem:[%s761_s1 + $0x50] sm:$0xff]  }
   0x2   :  { %v553_v2 = vld [vmem:[%s761_s1 + $0xc0] sm:$0xff]   ;;  %493 = vmatprep.subr.bf16.mxu0 %v552_v0  ;;  %v557_v6 = vld [vmem:[%s761_s1 + $0xc8] sm:$0xff]   ;;  %v561_v10 = vld [vmem:[%s761_s1 + $0xd0] sm:$0xff]  }
   0x3   :  { %v554_v3 = vld [vmem:[%s761_s1] sm:$0xff]   ;;  %521 = vmatprep.subr.bf16.mxu1 %v553_v2  ;;  %v558_v7 = vld [vmem:[%s761_s1 + $0x8] sm:$0xff]   ;;  %v562_v11 = vld [vmem:[%s761_s1 + $0x10] sm:$0xff]  }
   0x4   :  { %v555_v4 = vld [vmem:[%s761_s1 + $0x80] sm:$0xff]   ;;  %494 = vmatpush3.bf16.msra.mxu0 %v554_v3  ;;  %v559_v8 = vld [vmem:[%s761_s1 + $0x88] sm:$0xff]   ;;  %v563_v12 = vld [vmem:[%s761_s1 + $0x90] sm:$0xff]  }
   0x5   :  { %522 = vmatpush3.bf16.msra.mxu1 %v555_v4  ;;  %495 = vmatprep.subr.bf16.mxu0 %v556_v5  ;;  %v564_v13 = vld [vmem:[%s761_s1 + $0x58] sm:$0xff]   ;;  %v568_v17 = vld [vmem:[%s761_s1 + $0x60] sm:$0xff]   ;;  %v572_v21 = vld [vmem:[%s761_s1 + $0x68] sm:$0xff]  }
   0x6   :  { %523 = vmatprep.subr.bf16.mxu1 %v557_v6  ;;  %v565_v14 = vld [vmem:[%s761_s1 + $0xd8] sm:$0xff]   ;;  %v569_v18 = vld [vmem:[%s761_s1 + $0xe0] sm:$0xff]   ;;  %v573_v22 = vld [vmem:[%s761_s1 + $0xe8] sm:$0xff]  }
   0x7   :  { %v566_v15 = vld [vmem:[%s761_s1 + $0x18] sm:$0xff]   ;;  %v570_v19 = vld [vmem:[%s761_s1 + $0x20] sm:$0xff]   ;;  %v574_v23 = vld [vmem:[%s761_s1 + $0x28] sm:$0xff]  }
   0x8   :  { %496 = vmatpush3.bf16.msra.mxu0 %v558_v7  ;;  %v567_v16 = vld [vmem:[%s761_s1 + $0x98] sm:$0xff]   ;;  %v571_v20 = vld [vmem:[%s761_s1 + $0xa0] sm:$0xff]   ;;  %v575_v24 = vld [vmem:[%s761_s1 + $0xa8] sm:$0xff]  }
   0x9   :  { %524 = vmatpush3.bf16.msra.mxu1 %v559_v8  ;;  %497 = vmatprep.subr.bf16.mxu0 %v560_v9  ;;  %v576_v25 = vld [vmem:[%s761_s1 + $0x70] sm:$0xff]   ;;  %v580_v29 = vld [vmem:[%s761_s1 + $0x78] sm:$0xff]   ;;  %v87_v39 = vld [vmem:[%s763_s2] sm:$0xff] }
   0xa   :  { %525 = vmatprep.subr.bf16.mxu1 %v561_v10  ;;  %v577_v26 = vld [vmem:[%s761_s1 + $0xf0] sm:$0xff]   ;;  %v581_v30 = vld [vmem:[%s761_s1 + $0xf8] sm:$0xff]   ;;  %93 = vperm.xlu0 %550, %v87_v39   ;;  %v88_v41 = vld [vmem:[%s763_s2 + $0x8] sm:$0xff] }
   0xb   :  { %v578_v27 = vld [vmem:[%s761_s1 + $0x30] sm:$0xff]   ;;  %v582_v31 = vld [vmem:[%s761_s1 + $0x38] sm:$0xff]  }
   0xc   :  { %498 = vmatpush3.bf16.msra.mxu0 %v562_v11  ;;  %v579_v28 = vld [vmem:[%s761_s1 + $0xb0] sm:$0xff]   ;;  %v583_v32 = vld [vmem:[%s761_s1 + $0xb8] sm:$0xff]  }
   0xd   :  { %526 = vmatpush3.bf16.msra.mxu1 %v563_v12  ;;  %499 = vmatprep.subr.bf16.mxu0 %v564_v13  ;;  %v584_v33 = vld [vmem:[%s762_s0] ss:$16 sps:$4 sm:$0xff]   ;;  %v586_v34 = vld [vmem:[%s762_s0 + $0x4] ss:$16 sps:$4 sm:$0xff]   ;;  %v587_v35 = vld [vmem:[%s762_s0 + $0x8] ss:$16 sps:$4 sm:$0xff]  }
   0xe   :  { %527 = vmatprep.subr.bf16.mxu1 %v565_v14  ;;  %v589_v36 = vld [vmem:[%s762_s0 + $0xc] ss:$16 sps:$4 sm:$0xff]   ;;  %375 = vmatprep.mubr.bf16.mxu0 %v586_v34  ;;  %v590_v37 = vld [vmem:[%s762_s0 + $0x24] ss:$16 sps:$4 sm:$0xff]   ;;  %v594_v42 = vld [vmem:[%s762_s0 + $0x20] ss:$16 sps:$4 sm:$0xff]  }
   0xf   :  { %424 = vmatprep.mubr.bf16.mxu1 %v589_v36  ;;  %v592_v38 = vld [vmem:[%s762_s0 + $0x2c] ss:$16 sps:$4 sm:$0xff]   ;;  %v89_v40 = vld [vmem:[%s763_s2 + $0x10] sm:$0xff]  ;;  %v595_v44 = vld [vmem:[%s762_s0 + $0x28] ss:$16 sps:$4 sm:$0xff]   ;;  %98 = vperm.xlu0 %550, %v88_v41  }
  0x10   :  { %500 = vmatpush3.bf16.msra.mxu0 %v566_v15  ;;  %103 = vperm.xlu1 %551, %v89_v40   ;;  %v90_v43 = vld [vmem:[%s763_s2 + $0x18] sm:$0xff] }
  0x11   :  { %528 = vmatpush3.bf16.msra.mxu1 %v567_v16  ;;  %501 = vmatprep.subr.bf16.mxu0 %v568_v17 }
  0x12   :  { %529 = vmatprep.subr.bf16.mxu1 %v569_v18 }
  0x14   :  { %502 = vmatpush3.bf16.msra.mxu0 %v570_v19  ;;  %108 = vperm.xlu1 %551, %v90_v43  }
  0x15   :  { %530 = vmatpush3.bf16.msra.mxu1 %v571_v20  ;;  %503 = vmatprep.subr.bf16.mxu0 %v572_v21 }
  0x16   :  { %531 = vmatprep.subr.bf16.mxu1 %v573_v22 }
  0x18   :  { %504 = vmatpush3.bf16.msra.mxu0 %v574_v23 }
  0x19   :  { %532 = vmatpush3.bf16.msra.mxu1 %v575_v24  ;;  %505 = vmatprep.subr.bf16.mxu0 %v576_v25 }
  0x1a   :  { %533 = vmatprep.subr.bf16.mxu1 %v577_v26 }
  0x1c   :  { %506 = vmatpush3.bf16.msra.mxu0 %v578_v27 }
  0x1d   :  { %534 = vmatpush3.bf16.msra.mxu1 %v579_v28  ;;  %507 = vmatprep.subr.bf16.mxu0 %v580_v29 }
  0x1e   :  { %535 = vmatprep.subr.bf16.mxu1 %v581_v30 }
  0x20   :  { %508 = vmatpush3.bf16.msra.mxu0 %v582_v31 }
  0x21   :  { %536 = vmatpush3.bf16.msra.mxu1 %v583_v32 }
  0x23   :  { %376 = vmatmul.mubr.bf16.vlgmr.msra.gmra.mrb[0].mxu0 %v584_v33 }
  0x24   :  { %425 = vmatmul.mubr.bf16.vlgmr.msra.gmra.mrb[0].mxu1 %v587_v35  ;;  %383 = vmatprep.mubr.bf16.mxu0 %v590_v37 }
  0x25   :  { %432 = vmatprep.mubr.bf16.mxu1 %v592_v38 }
  0x2b   :  { %384 = vmatmul.mubr.bf16.gmra.mrb[4].mxu0 %v594_v42 }
  0x2c   :  { %433 = vmatmul.mubr.bf16.gmra.mrb[4].mxu1 %v595_v44 }
  0x89   :  { %v94_v45 = vpop.permute.xlu0 %93 }
  0x8e   :  { %v99_v47 = vpop.permute.xlu0 %98 }
  0x8f   :  { %v104_v62 = vpop.permute.xlu1 %103 }
  0x93   :  { %v109_v14 = vpop.permute.xlu1 %108 }
  0xf6   :  { %v509_v46 = vpop.f32.mrb[0].mxu0 }
  0xf7   :  { %v537_v48 = vpop.f32.mrb[0].mxu1  ;;  %v510_v49 = vpop.f32.mrb[1].mxu0 }
  0xf8   :  { %v511_v50 = vadd.f32 %v510_v49, %v509_v46  ;;  %v538_v51 = vpop.f32.mrb[1].mxu1  ;;  %v512_v52 = vpop.f32.mrb[2].mxu0 }
  0xf9   :  { %v539_v53 = vadd.f32 %v538_v51, %v537_v48  ;;  %v540_v54 = vpop.f32.mrb[2].mxu1  ;;  %v513_v55 = vpop.f32.mrb[3].mxu0 }
  0xfa   :  { %v378_v56 = vadd.f32 %v511_v50, %v94_v45  ;;  %v514_v57 = vadd.f32 %v513_v55, %v512_v52  ;;  %v541_v58 = vpop.f32.mrb[3].mxu1 }
  0xfb   :  { %v542_v59 = vadd.f32 %v541_v58, %v540_v54 }
  0xfc   :  { %v427_v60 = vadd.f32 %v539_v53, %v378_v56  ;;  %v381_v61 = vadd.f32 %v514_v57, %v99_v47 }
  0xfe   :  { %v441_v63 = vmax.f32 %v427_v60, 0.0  ;;  %v430_v0 = vadd.f32 %v542_v59, %v381_v61  ;;  %v515_v1 = vpop.f32.mrb[4].mxu0 }
  0xff   :  { %v543_v2 = vpop.f32.mrb[4].mxu1  ;;  %v516_v3 = vpop.f32.mrb[5].mxu0 }
 0x100   :  { %445 = vst [vmem:[%s764_s3] sm:$0xff] %v441_v63  ;;  %v442_v4 = vmax.f32 %v430_v0, 0.0  ;;  %v517_v5 = vadd.f32 %v516_v3, %v515_v1  ;;  %v544_v6 = vpop.f32.mrb[5].mxu1  ;;  %v518_v7 = vpop.f32.mrb[6].mxu0 }
 0x101   :  { %v545_v8 = vadd.f32 %v544_v6, %v543_v2  ;;  %v546_v9 = vpop.f32.mrb[6].mxu1  ;;  %v519_v10 = vpop.f32.mrb[7].mxu0 }
 0x102   :  { %446 = vst [vmem:[%s764_s3 + $0x8] sm:$0xff] %v442_v4  ;;  %v386_v11 = vadd.f32 %v517_v5, %v104_v62  ;;  %v520_v12 = vadd.f32 %v519_v10, %v518_v7  ;;  %v547_v13 = vpop.f32.mrb[7].mxu1 }
 0x103   :  { %v548_v15 = vadd.f32 %v547_v13, %v546_v9 }
 0x104   :  { %v435_v16 = vadd.f32 %v545_v8, %v386_v11  ;;  %v389_v17 = vadd.f32 %v520_v12, %v109_v14 }
 0x106   :  { %v443_v18 = vmax.f32 %v435_v16, 0.0  ;;  %v438_v19 = vadd.f32 %v548_v15, %v389_v17 }
 0x108   :  { %447 = vst [vmem:[%s764_s3 + $0x10] sm:$0xff] %v443_v18  ;;  %v444_v20 = vmax.f32 %v438_v19, 0.0 }
 0x10a   :  { %448 = vst [vmem:[%s764_s3 + $0x18] sm:$0xff] %v444_v20 }

// kernel: betacvae_forward.9
= control target key start
LH: loop header
LB: loop body
LE: loop exit
PB: predicated region body
PF: predicated region fallthrough
CT: control target
= control target key end

     0   :  { %v1369_v8 = vmov 0   ;;  %v1370_v37 = vmov 1983009808   ;;  %v154_v39 = vlaneseq  ;;  %s1793_s1 = inlined_call_operand.vmem [shape: bf16[512,512], index: 1, kind: input, shape index: {}]   ;;  %s1794_s0 = inlined_call_operand.vmem [shape: bf16[4,512], index: 0, kind: input, shape index: {}]   ;;  %s1795_s2 = inlined_call_operand.vmem [shape: f32[4,1], index: 2, kind: input, shape index: {}]   ;;  %s1796_s3 = inlined_call_operand.vmem [shape: f32[4,512], index: 3, kind: output, shape index: {}]  }
   0x1   :  { %v1160_v0 = vld [vmem:[%s1793_s1 + $0x4] ss:$16 sps:$4 sm:$0xff]   ;;  %v1162_v1 = vld [vmem:[%s1793_s1 + $0xc] ss:$16 sps:$4 sm:$0xff]   ;;  %v1164_v2 = vld [vmem:[%s1793_s1] ss:$16 sps:$4 sm:$0xff]   ;;  %1159 = vset.pattern.permute.xlu0 %v1369_v8  ;;  %v152_v38 = vunpack.c.l.s4 %v1370_v37 }
   0x2   :  { %811 = vmatprep.subr.bf16.mxu0 %v1160_v0  ;;  %v1165_v3 = vld [vmem:[%s1793_s1 + $0x8] ss:$16 sps:$4 sm:$0xff]   ;;  %893 = vmatprep.subr.bf16.mxu1 %v1162_v1  ;;  %v1166_v4 = vld [vmem:[%s1793_s1 + $0x24] ss:$16 sps:$4 sm:$0xff]   ;;  %v1168_v5 = vld [vmem:[%s1793_s1 + $0x2c] ss:$16 sps:$4 sm:$0xff]  }
   0x3   :  { %812 = vmatpush1.bf16.msra.mxu0 %v1164_v2  ;;  %894 = vmatpush1.bf16.msra.mxu1 %v1165_v3  ;;  %v1170_v6 = vld [vmem:[%s1793_s1 + $0x20] ss:$16 sps:$4 sm:$0xff]   ;;  %v1171_v7 = vld [vmem:[%s1793_s1 + $0x28] ss:$16 sps:$4 sm:$0xff]   ;;  %v1172_v9 = vld [vmem:[%s1793_s1 + $0x44] ss:$16 sps:$4 sm:$0xff]   ;;  %v153_v43 = vunpack.c.0.s8 %v152_v38 }
   0x4   :  { %813 = vmatprep.subr.bf16.mxu0 %v1166_v4  ;;  %895 = vmatprep.subr.bf16.mxu1 %v1168_v5  ;;  %v1174_v10 = vld [vmem:[%s1793_s1 + $0x4c] ss:$16 sps:$4 sm:$0xff]   ;;  %v1176_v11 = vld [vmem:[%s1793_s1 + $0x40] ss:$16 sps:$4 sm:$0xff]   ;;  %v1177_v12 = vld [vmem:[%s1793_s1 + $0x48] ss:$16 sps:$4 sm:$0xff]  }
   0x5   :  { %v1178_v13 = vld [vmem:[%s1793_s1 + $0x64] ss:$16 sps:$4 sm:$0xff]   ;;  %v1180_v14 = vld [vmem:[%s1793_s1 + $0x6c] ss:$16 sps:$4 sm:$0xff]   ;;  %v1182_v15 = vld [vmem:[%s1793_s1 + $0x60] ss:$16 sps:$4 sm:$0xff]  }
   0x6   :  { %v1183_v16 = vld [vmem:[%s1793_s1 + $0x68] ss:$16 sps:$4 sm:$0xff]   ;;  %v1184_v17 = vld [vmem:[%s1793_s1 + $0x84] ss:$16 sps:$4 sm:$0xff]   ;;  %v1186_v18 = vld [vmem:[%s1793_s1 + $0x8c] ss:$16 sps:$4 sm:$0xff]  }
   0x7   :  { %814 = vmatpush1.bf16.msra.mxu0 %v1170_v6  ;;  %896 = vmatpush1.bf16.msra.mxu1 %v1171_v7  ;;  %v1188_v19 = vld [vmem:[%s1793_s1 + $0x80] ss:$16 sps:$4 sm:$0xff]   ;;  %v1189_v20 = vld [vmem:[%s1793_s1 + $0x88] ss:$16 sps:$4 sm:$0xff]   ;;  %v1190_v21 = vld [vmem:[%s1793_s1 + $0xa4] ss:$16 sps:$4 sm:$0xff]  }
   0x8   :  { %815 = vmatprep.subr.bf16.mxu0 %v1172_v9  ;;  %897 = vmatprep.subr.bf16.mxu1 %v1174_v10  ;;  %v1192_v22 = vld [vmem:[%s1793_s1 + $0xac] ss:$16 sps:$4 sm:$0xff]   ;;  %v1194_v23 = vld [vmem:[%s1793_s1 + $0xa0] ss:$16 sps:$4 sm:$0xff]   ;;  %v1195_v24 = vld [vmem:[%s1793_s1 + $0xa8] ss:$16 sps:$4 sm:$0xff]  }
   0x9   :  { %v1196_v25 = vld [vmem:[%s1793_s1 + $0xc4] ss:$16 sps:$4 sm:$0xff]   ;;  %v1198_v26 = vld [vmem:[%s1793_s1 + $0xcc] ss:$16 sps:$4 sm:$0xff]   ;;  %v1200_v27 = vld [vmem:[%s1793_s1 + $0xc0] ss:$16 sps:$4 sm:$0xff]  }
   0xa   :  { %v1201_v28 = vld [vmem:[%s1793_s1 + $0xc8] ss:$16 sps:$4 sm:$0xff]   ;;  %v1202_v29 = vld [vmem:[%s1793_s1 + $0xe4] ss:$16 sps:$4 sm:$0xff]   ;;  %v1204_v30 = vld [vmem:[%s1793_s1 + $0xec] ss:$16 sps:$4 sm:$0xff]  }
   0xb   :  { %816 = vmatpush1.bf16.msra.mxu0 %v1176_v11  ;;  %898 = vmatpush1.bf16.msra.mxu1 %v1177_v12  ;;  %v1206_v31 = vld [vmem:[%s1793_s1 + $0xe0] ss:$16 sps:$4 sm:$0xff]   ;;  %v1207_v32 = vld [vmem:[%s1793_s1 + $0xe8] ss:$16 sps:$4 sm:$0xff]   ;;  %v1208_v33 = vld [vmem:[%s1793_s1 + $0x104] ss:$16 sps:$4 sm:$0xff]  }
   0xc   :  { %817 = vmatprep.subr.bf16.mxu0 %v1178_v13  ;;  %899 = vmatprep.subr.bf16.mxu1 %v1180_v14  ;;  %v1210_v34 = vld [vmem:[%s1793_s1 + $0x10c] ss:$16 sps:$4 sm:$0xff]   ;;  %v1212_v35 = vld [vmem:[%s1793_s1 + $0x100] ss:$16 sps:$4 sm:$0xff]   ;;  %v1213_v36 = vld [vmem:[%s1793_s1 + $0x108] ss:$16 sps:$4 sm:$0xff]  }
   0xd   :  { %v1214_v40 = vld [vmem:[%s1793_s1 + $0x124] ss:$16 sps:$4 sm:$0xff]   ;;  %v1216_v41 = vld [vmem:[%s1793_s1 + $0x12c] ss:$16 sps:$4 sm:$0xff]   ;;  %v1218_v42 = vld [vmem:[%s1793_s1 + $0x120] ss:$16 sps:$4 sm:$0xff]  }
   0xe   :  { %v155_v44 = vshrl.u32 %v154_v39, 7  ;;  %v1219_v45 = vld [vmem:[%s1793_s1 + $0x128] ss:$16 sps:$4 sm:$0xff]   ;;  %v1220_v46 = vld [vmem:[%s1793_s1 + $0x144] ss:$16 sps:$4 sm:$0xff]  }
   0xf   :  { %818 = vmatpush1.bf16.msra.mxu0 %v1182_v15  ;;  %900 = vmatpush1.bf16.msra.mxu1 %v1183_v16  ;;  %v1222_v47 = vld [vmem:[%s1793_s1 + $0x14c] ss:$16 sps:$4 sm:$0xff]   ;;  %v1224_v48 = vld [vmem:[%s1793_s1 + $0x140] ss:$16 sps:$4 sm:$0xff]   ;;  %v1225_v49 = vld [vmem:[%s1793_s1 + $0x148] ss:$16 sps:$4 sm:$0xff]  }
  0x10   :  { %819 = vmatprep.subr.bf16.mxu0 %v1184_v17  ;;  %901 = vmatprep.subr.bf16.mxu1 %v1186_v18  ;;  %v156_v50 = vsub.s32 %v153_v43, %v155_v44  ;;  %v1226_v51 = vld [vmem:[%s1793_s1 + $0x164] ss:$16 sps:$4 sm:$0xff]   ;;  %v1228_v52 = vld [vmem:[%s1793_s1 + $0x16c] ss:$16 sps:$4 sm:$0xff]   ;;  %v1230_v54 = vld [vmem:[%s1793_s1 + $0x160] ss:$16 sps:$4 sm:$0xff]  }
  0x11   :  { %v14_v53 = vld [vmem:[%s1794_s0] sm:$0xff]  ;;  %v1231_v56 = vld [vmem:[%s1793_s1 + $0x168] ss:$16 sps:$4 sm:$0xff]   ;;  %v1234_v58 = vld [vmem:[%s1793_s1 + $0x18c] ss:$16 sps:$4 sm:$0xff]  }
  0x12   :  { %v157_v55 = vrot.slane %v14_v53, %v156_v50  ;;  %v1232_v57 = vld [vmem:[%s1793_s1 + $0x184] ss:$16 sps:$4 sm:$0xff]   ;;  %v1236_v60 = vld [vmem:[%s1793_s1 + $0x180] ss:$16 sps:$4 sm:$0xff]   ;;  %v1237_v61 = vld [vmem:[%s1793_s1 + $0x188] ss:$16 sps:$4 sm:$0xff]   ;;  %v150_v8 = vcombine.high %v14_v53, %v14_v53 }
  0x13   :  { %820 = vmatpush1.bf16.msra.mxu0 %v1188_v19  ;;  %902 = vmatpush1.bf16.msra.mxu1 %v1189_v20  ;;  %v1238_v62 = vld [vmem:[%s1793_s1 + $0x1a4] ss:$16 sps:$4 sm:$0xff]   ;;  %v1240_v63 = vld [vmem:[%s1793_s1 + $0x1ac] ss:$16 sps:$4 sm:$0xff]   ;;  %v1242_v0 = vld [vmem:[%s1793_s1 + $0x1a0] ss:$16 sps:$4 sm:$0xff]  }
  0x14   :  { %821 = vmatprep.subr.bf16.mxu0 %v1190_v21  ;;  %903 = vmatprep.subr.bf16.mxu1 %v1192_v22  ;;  %v165_v59 = vcombine.high %v157_v55, %v157_v55  ;;  %v1243_v1 = vld [vmem:[%s1793_s1 + $0x1a8] ss:$16 sps:$4 sm:$0xff]   ;;  %v1244_v2 = vld [vmem:[%s1793_s1 + $0x1c4] ss:$16 sps:$4 sm:$0xff]   ;;  %v1246_v3 = vld [vmem:[%s1793_s1 + $0x1cc] ss:$16 sps:$4 sm:$0xff]   ;;  %v1592_v13 = vrot.slane %v150_v8, %v156_v50 }
  0x15   :  { %v1248_v4 = vld [vmem:[%s1793_s1 + $0x1c0] ss:$16 sps:$4 sm:$0xff]   ;;  %v1249_v5 = vld [vmem:[%s1793_s1 + $0x1c8] ss:$16 sps:$4 sm:$0xff]   ;;  %v1250_v6 = vld [vmem:[%s1793_s1 + $0x1e4] ss:$16 sps:$4 sm:$0xff]  }
  0x16   :  { %843 = vmatprep.mubr.bf16.mxu0 %v165_v59  ;;  %925 = vmatprep.mubr.bf16.mxu1 %v165_v59  ;;  %v1252_v7 = vld [vmem:[%s1793_s1 + $0x1ec] ss:$16 sps:$4 sm:$0xff]   ;;  %v1254_v9 = vld [vmem:[%s1793_s1 + $0x1e0] ss:$16 sps:$4 sm:$0xff]   ;;  %v1255_v10 = vld [vmem:[%s1793_s1 + $0x1e8] ss:$16 sps:$4 sm:$0xff]   ;;  %v166_v18 = vcombine.high %v1592_v13, %v1592_v13 }
  0x17   :  { %822 = vmatpush1.bf16.msra.mxu0 %v1194_v23  ;;  %904 = vmatpush1.bf16.msra.mxu1 %v1195_v24  ;;  %v1259_v11 = vld [vmem:[%s1793_s1 + $0x204] ss:$16 sps:$4 sm:$0xff]   ;;  %v1262_v12 = vld [vmem:[%s1793_s1 + $0x20c] ss:$16 sps:$4 sm:$0xff]   ;;  %v1257_v14 = vld [vmem:[%s1793_s1 + $0x200] ss:$16 sps:$4 sm:$0xff]  }
  0x18   :  { %823 = vmatprep.subr.bf16.mxu0 %v1196_v25  ;;  %905 = vmatprep.subr.bf16.mxu1 %v1198_v26  ;;  %v1260_v15 = vld [vmem:[%s1793_s1 + $0x208] ss:$16 sps:$4 sm:$0xff]   ;;  %v1265_v16 = vld [vmem:[%s1793_s1 + $0x224] ss:$16 sps:$4 sm:$0xff]   ;;  %v1268_v17 = vld [vmem:[%s1793_s1 + $0x22c] ss:$16 sps:$4 sm:$0xff]  }
  0x19   :  { %v1263_v19 = vld [vmem:[%s1793_s1 + $0x220] ss:$16 sps:$4 sm:$0xff]   ;;  %v1266_v20 = vld [vmem:[%s1793_s1 + $0x228] ss:$16 sps:$4 sm:$0xff]   ;;  %v1271_v21 = vld [vmem:[%s1793_s1 + $0x244] ss:$16 sps:$4 sm:$0xff]  }
  0x1a   :  { %v1274_v22 = vld [vmem:[%s1793_s1 + $0x24c] ss:$16 sps:$4 sm:$0xff]   ;;  %v1269_v23 = vld [vmem:[%s1793_s1 + $0x240] ss:$16 sps:$4 sm:$0xff]   ;;  %v1272_v24 = vld [vmem:[%s1793_s1 + $0x248] ss:$16 sps:$4 sm:$0xff]  }
  0x1b   :  { %824 = vmatpush1.bf16.msra.mxu0 %v1200_v27  ;;  %906 = vmatpush1.bf16.msra.mxu1 %v1201_v28  ;;  %v1277_v25 = vld [vmem:[%s1793_s1 + $0x264] ss:$16 sps:$4 sm:$0xff]   ;;  %v1280_v26 = vld [vmem:[%s1793_s1 + $0x26c] ss:$16 sps:$4 sm:$0xff]   ;;  %v1275_v27 = vld [vmem:[%s1793_s1 + $0x260] ss:$16 sps:$4 sm:$0xff]  }
  0x1c   :  { %825 = vmatprep.subr.bf16.mxu0 %v1202_v29  ;;  %907 = vmatprep.subr.bf16.mxu1 %v1204_v30  ;;  %v1278_v28 = vld [vmem:[%s1793_s1 + $0x268] ss:$16 sps:$4 sm:$0xff]   ;;  %v1283_v29 = vld [vmem:[%s1793_s1 + $0x284] ss:$16 sps:$4 sm:$0xff]   ;;  %v1286_v30 = vld [vmem:[%s1793_s1 + $0x28c] ss:$16 sps:$4 sm:$0xff]  }
  0x1d   :  { %v1295_v37 = vld [vmem:[%s1793_s1 + $0x2c4] ss:$16 sps:$4 sm:$0xff]   ;;  %v1298_v38 = vld [vmem:[%s1793_s1 + $0x2cc] ss:$16 sps:$4 sm:$0xff]   ;;  %v143_v39 = vld [vmem:[%s1795_s2] sm:$0xf] }
  0x1e   :  { %146 = vperm.xlu0 %1159, %v143_v39   ;;  %v1304_v43 = vld [vmem:[%s1793_s1 + $0x2ec] ss:$16 sps:$4 sm:$0xff]   ;;  %v1299_v44 = vld [vmem:[%s1793_s1 + $0x2e0] ss:$16 sps:$4 sm:$0xff]   ;;  %v1313_v50 = vld [vmem:[%s1793_s1 + $0x324] ss:$16 sps:$4 sm:$0xff]  }
  0x1f   :  { %826 = vmatpush1.bf16.msra.mxu0 %v1206_v31  ;;  %908 = vmatpush1.bf16.msra.mxu1 %v1207_v32  ;;  %v1281_v31 = vld [vmem:[%s1793_s1 + $0x280] ss:$16 sps:$4 sm:$0xff]   ;;  %v1284_v32 = vld [vmem:[%s1793_s1 + $0x288] ss:$16 sps:$4 sm:$0xff]   ;;  %v1328_v59 = vld [vmem:[%s1793_s1 + $0x36c] ss:$16 sps:$4 sm:$0xff]  }
  0x20   :  { %827 = vmatprep.subr.bf16.mxu0 %v1208_v33  ;;  %909 = vmatprep.subr.bf16.mxu1 %v1210_v34  ;;  %v1289_v33 = vld [vmem:[%s1793_s1 + $0x2a4] ss:$16 sps:$4 sm:$0xff]   ;;  %v1292_v34 = vld [vmem:[%s1793_s1 + $0x2ac] ss:$16 sps:$4 sm:$0xff]   ;;  %v1314_v53 = vld [vmem:[%s1793_s1 + $0x328] ss:$16 sps:$4 sm:$0xff]  }
  0x21   :  { %v1341_v8 = vld [vmem:[%s1793_s1 + $0x3c0] ss:$16 sps:$4 sm:$0xff]  }
  0x23   :  { %828 = vmatpush1.bf16.msra.mxu0 %v1212_v35  ;;  %910 = vmatpush1.bf16.msra.mxu1 %v1213_v36  ;;  %v1287_v35 = vld [vmem:[%s1793_s1 + $0x2a0] ss:$16 sps:$4 sm:$0xff]   ;;  %v1290_v36 = vld [vmem:[%s1793_s1 + $0x2a8] ss:$16 sps:$4 sm:$0xff]  }
  0x24   :  { %829 = vmatprep.subr.bf16.mxu0 %v1214_v40  ;;  %911 = vmatprep.subr.bf16.mxu1 %v1216_v41  ;;  %v1293_v40 = vld [vmem:[%s1793_s1 + $0x2c0] ss:$16 sps:$4 sm:$0xff]   ;;  %v1296_v41 = vld [vmem:[%s1793_s1 + $0x2c8] ss:$16 sps:$4 sm:$0xff]  }
  0x27   :  { %830 = vmatpush1.bf16.msra.mxu0 %v1218_v42  ;;  %912 = vmatpush1.bf16.msra.mxu1 %v1219_v45  ;;  %v1301_v42 = vld [vmem:[%s1793_s1 + $0x2e4] ss:$16 sps:$4 sm:$0xff]   ;;  %v1302_v45 = vld [vmem:[%s1793_s1 + $0x2e8] ss:$16 sps:$4 sm:$0xff]  }
  0x28   :  { %831 = vmatprep.subr.bf16.mxu0 %v1220_v46  ;;  %913 = vmatprep.subr.bf16.mxu1 %v1222_v47  ;;  %v1307_v46 = vld [vmem:[%s1793_s1 + $0x304] ss:$16 sps:$4 sm:$0xff]   ;;  %v1310_v47 = vld [vmem:[%s1793_s1 + $0x30c] ss:$16 sps:$4 sm:$0xff]  }
  0x2b   :  { %832 = vmatpush1.bf16.msra.mxu0 %v1224_v48  ;;  %914 = vmatpush1.bf16.msra.mxu1 %v1225_v49  ;;  %v1305_v48 = vld [vmem:[%s1793_s1 + $0x300] ss:$16 sps:$4 sm:$0xff]   ;;  %v1308_v49 = vld [vmem:[%s1793_s1 + $0x308] ss:$16 sps:$4 sm:$0xff]  }
  0x2c   :  { %833 = vmatprep.subr.bf16.mxu0 %v1226_v51  ;;  %915 = vmatprep.subr.bf16.mxu1 %v1228_v52  ;;  %v1316_v51 = vld [vmem:[%s1793_s1 + $0x32c] ss:$16 sps:$4 sm:$0xff]   ;;  %v1311_v52 = vld [vmem:[%s1793_s1 + $0x320] ss:$16 sps:$4 sm:$0xff]  }
  0x2f   :  { %834 = vmatpush1.bf16.msra.mxu0 %v1230_v54  ;;  %916 = vmatpush1.bf16.msra.mxu1 %v1231_v56  ;;  %v1319_v54 = vld [vmem:[%s1793_s1 + $0x344] ss:$16 sps:$4 sm:$0xff]   ;;  %v1317_v56 = vld [vmem:[%s1793_s1 + $0x340] ss:$16 sps:$4 sm:$0xff]  }
  0x30   :  { %835 = vmatprep.subr.bf16.mxu0 %v1232_v57  ;;  %917 = vmatprep.subr.bf16.mxu1 %v1234_v58  ;;  %v1320_v57 = vld [vmem:[%s1793_s1 + $0x348] ss:$16 sps:$4 sm:$0xff]   ;;  %v1325_v58 = vld [vmem:[%s1793_s1 + $0x364] ss:$16 sps:$4 sm:$0xff]  }
  0x33   :  { %836 = vmatpush1.bf16.msra.mxu0 %v1236_v60  ;;  %918 = vmatpush1.bf16.msra.mxu1 %v1237_v61  ;;  %v1323_v60 = vld [vmem:[%s1793_s1 + $0x360] ss:$16 sps:$4 sm:$0xff]   ;;  %v1326_v61 = vld [vmem:[%s1793_s1 + $0x368] ss:$16 sps:$4 sm:$0xff]  }
  0x34   :  { %837 = vmatprep.subr.bf16.mxu0 %v1238_v62  ;;  %919 = vmatprep.subr.bf16.mxu1 %v1240_v63  ;;  %v1331_v62 = vld [vmem:[%s1793_s1 + $0x384] ss:$16 sps:$4 sm:$0xff]   ;;  %v1334_v63 = vld [vmem:[%s1793_s1 + $0x38c] ss:$16 sps:$4 sm:$0xff]  }
  0x37   :  { %838 = vmatpush1.bf16.msra.mxu0 %v1242_v0  ;;  %920 = vmatpush1.bf16.msra.mxu1 %v1243_v1  ;;  %v1329_v0 = vld [vmem:[%s1793_s1 + $0x380] ss:$16 sps:$4 sm:$0xff]   ;;  %v1332_v1 = vld [vmem:[%s1793_s1 + $0x388] ss:$16 sps:$4 sm:$0xff]  }
  0x38   :  { %839 = vmatprep.subr.bf16.mxu0 %v1244_v2  ;;  %921 = vmatprep.subr.bf16.mxu1 %v1246_v3  ;;  %v1337_v2 = vld [vmem:[%s1793_s1 + $0x3a4] ss:$16 sps:$4 sm:$0xff]   ;;  %v1340_v3 = vld [vmem:[%s1793_s1 + $0x3ac] ss:$16 sps:$4 sm:$0xff]  }
  0x3b   :  { %840 = vmatpush1.bf16.msra.mxu0 %v1248_v4  ;;  %922 = vmatpush1.bf16.msra.mxu1 %v1249_v5  ;;  %v1335_v4 = vld [vmem:[%s1793_s1 + $0x3a0] ss:$16 sps:$4 sm:$0xff]   ;;  %v1338_v5 = vld [vmem:[%s1793_s1 + $0x3a8] ss:$16 sps:$4 sm:$0xff]  }
  0x3c   :  { %841 = vmatprep.subr.bf16.mxu0 %v1250_v6  ;;  %923 = vmatprep.subr.bf16.mxu1 %v1252_v7  ;;  %v1343_v6 = vld [vmem:[%s1793_s1 + $0x3c4] ss:$16 sps:$4 sm:$0xff]   ;;  %v1346_v7 = vld [vmem:[%s1793_s1 + $0x3cc] ss:$16 sps:$4 sm:$0xff]  }
  0x3f   :  { %842 = vmatpush1.bf16.msra.mxu0 %v1254_v9  ;;  %924 = vmatpush1.bf16.msra.mxu1 %v1255_v10  ;;  %v1344_v9 = vld [vmem:[%s1793_s1 + $0x3c8] ss:$16 sps:$4 sm:$0xff]   ;;  %v1349_v10 = vld [vmem:[%s1793_s1 + $0x3e4] ss:$16 sps:$4 sm:$0xff]  }
  0x40   :  { %852 = vmatprep.subr.bf16.mxu0 %v1259_v11  ;;  %934 = vmatprep.subr.bf16.mxu1 %v1262_v12  ;;  %v1352_v11 = vld [vmem:[%s1793_s1 + $0x3ec] ss:$16 sps:$4 sm:$0xff]   ;;  %v1347_v12 = vld [vmem:[%s1793_s1 + $0x3e0] ss:$16 sps:$4 sm:$0xff]  }
  0x42   :  { %844 = vmatmul.mubr.bf16.vlgmr.msra.gmra.mrb[0].mxu0 %v157_v55  ;;  %926 = vmatmul.mubr.bf16.vlgmr.msra.gmra.mrb[0].mxu1 %v157_v55  ;;  %v1322_v55 = vld [vmem:[%s1793_s1 + $0x34c] ss:$16 sps:$4 sm:$0xff]  }
  0x43   :  { %853 = vmatpush1.bf16.msra.mxu0 %v1257_v14  ;;  %935 = vmatpush1.bf16.msra.mxu1 %v1260_v15  ;;  %v1350_v14 = vld [vmem:[%s1793_s1 + $0x3e8] ss:$16 sps:$4 sm:$0xff]  }
  0x44   :  { %854 = vmatprep.subr.bf16.mxu0 %v1265_v16  ;;  %936 = vmatprep.subr.bf16.mxu1 %v1268_v17 }
  0x45   :  { %884 = vmatprep.mubr.bf16.mxu0 %v166_v18  ;;  %966 = vmatprep.mubr.bf16.mxu1 %v166_v18 }
  0x47   :  { %855 = vmatpush1.bf16.msra.mxu0 %v1263_v19  ;;  %937 = vmatpush1.bf16.msra.mxu1 %v1266_v20 }
  0x48   :  { %856 = vmatprep.subr.bf16.mxu0 %v1271_v21  ;;  %938 = vmatprep.subr.bf16.mxu1 %v1274_v22 }
  0x4b   :  { %857 = vmatpush1.bf16.msra.mxu0 %v1269_v23  ;;  %939 = vmatpush1.bf16.msra.mxu1 %v1272_v24 }
  0x4c   :  { %858 = vmatprep.subr.bf16.mxu0 %v1277_v25  ;;  %940 = vmatprep.subr.bf16.mxu1 %v1280_v26 }
  0x4f   :  { %859 = vmatpush1.bf16.msra.mxu0 %v1275_v27  ;;  %941 = vmatpush1.bf16.msra.mxu1 %v1278_v28 }
  0x50   :  { %860 = vmatprep.subr.bf16.mxu0 %v1283_v29  ;;  %942 = vmatprep.subr.bf16.mxu1 %v1286_v30 }
  0x53   :  { %861 = vmatpush1.bf16.msra.mxu0 %v1281_v31  ;;  %943 = vmatpush1.bf16.msra.mxu1 %v1284_v32 }
  0x54   :  { %862 = vmatprep.subr.bf16.mxu0 %v1289_v33  ;;  %944 = vmatprep.subr.bf16.mxu1 %v1292_v34 }
  0x57   :  { %863 = vmatpush1.bf16.msra.mxu0 %v1287_v35  ;;  %945 = vmatpush1.bf16.msra.mxu1 %v1290_v36 }
  0x58   :  { %864 = vmatprep.subr.bf16.mxu0 %v1295_v37  ;;  %946 = vmatprep.subr.bf16.mxu1 %v1298_v38 }
  0x5b   :  { %865 = vmatpush1.bf16.msra.mxu0 %v1293_v40  ;;  %947 = vmatpush1.bf16.msra.mxu1 %v1296_v41 }
  0x5c   :  { %866 = vmatprep.subr.bf16.mxu0 %v1301_v42  ;;  %948 = vmatprep.subr.bf16.mxu1 %v1304_v43 }
  0x5f   :  { %867 = vmatpush1.bf16.msra.mxu0 %v1299_v44  ;;  %949 = vmatpush1.bf16.msra.mxu1 %v1302_v45 }
  0x60   :  { %868 = vmatprep.subr.bf16.mxu0 %v1307_v46  ;;  %950 = vmatprep.subr.bf16.mxu1 %v1310_v47 }
  0x63   :  { %869 = vmatpush1.bf16.msra.mxu0 %v1305_v48  ;;  %951 = vmatpush1.bf16.msra.mxu1 %v1308_v49 }
  0x64   :  { %870 = vmatprep.subr.bf16.mxu0 %v1313_v50  ;;  %952 = vmatprep.subr.bf16.mxu1 %v1316_v51 }
  0x67   :  { %871 = vmatpush1.bf16.msra.mxu0 %v1311_v52  ;;  %953 = vmatpush1.bf16.msra.mxu1 %v1314_v53 }
  0x68   :  { %872 = vmatprep.subr.bf16.mxu0 %v1319_v54  ;;  %954 = vmatprep.subr.bf16.mxu1 %v1322_v55 }
  0x6b   :  { %873 = vmatpush1.bf16.msra.mxu0 %v1317_v56  ;;  %955 = vmatpush1.bf16.msra.mxu1 %v1320_v57 }
  0x6c   :  { %874 = vmatprep.subr.bf16.mxu0 %v1325_v58  ;;  %956 = vmatprep.subr.bf16.mxu1 %v1328_v59 }
  0x6f   :  { %875 = vmatpush1.bf16.msra.mxu0 %v1323_v60  ;;  %957 = vmatpush1.bf16.msra.mxu1 %v1326_v61 }
  0x70   :  { %876 = vmatprep.subr.bf16.mxu0 %v1331_v62  ;;  %958 = vmatprep.subr.bf16.mxu1 %v1334_v63 }
  0x73   :  { %877 = vmatpush1.bf16.msra.mxu0 %v1329_v0  ;;  %959 = vmatpush1.bf16.msra.mxu1 %v1332_v1 }
  0x74   :  { %878 = vmatprep.subr.bf16.mxu0 %v1337_v2  ;;  %960 = vmatprep.subr.bf16.mxu1 %v1340_v3 }
  0x77   :  { %879 = vmatpush1.bf16.msra.mxu0 %v1335_v4  ;;  %961 = vmatpush1.bf16.msra.mxu1 %v1338_v5 }
  0x78   :  { %880 = vmatprep.subr.bf16.mxu0 %v1343_v6  ;;  %962 = vmatprep.subr.bf16.mxu1 %v1346_v7 }
  0x7b   :  { %881 = vmatpush1.bf16.msra.mxu0 %v1341_v8  ;;  %963 = vmatpush1.bf16.msra.mxu1 %v1344_v9 }
  0x7c   :  { %882 = vmatprep.subr.bf16.mxu0 %v1349_v10  ;;  %964 = vmatprep.subr.bf16.mxu1 %v1352_v11 }
  0x7f   :  { %883 = vmatpush1.bf16.msra.mxu0 %v1347_v12  ;;  %965 = vmatpush1.bf16.msra.mxu1 %v1350_v14 }
  0x82   :  { %885 = vmatmul.mubr.bf16.vlgmr.msra.gmra.mrb[0].mxu0 %v1592_v13  ;;  %967 = vmatmul.mubr.bf16.vlgmr.msra.gmra.mrb[0].mxu1 %v1592_v13 }
  0x9d   :  { %v147_v15 = vpop.permute.xlu0 %146 }
 0x155   :  { %v886_v16 = vpop.f32.mrb[0].mxu0  ;;  %v968_v17 = vpop.f32.mrb[0].mxu1 }
 0x156   :  { %v1145_v18 = vadd.f32 %v886_v16, %v147_v15  ;;  %v1147_v19 = vadd.f32 %v968_v17, %v147_v15  ;;  %v888_v20 = vpop.f32.mrb[1].mxu0  ;;  %v970_v21 = vpop.f32.mrb[1].mxu1 }
 0x157   :  { %v1146_v22 = vadd.f32 %v888_v20, %v147_v15  ;;  %v1148_v23 = vadd.f32 %v970_v21, %v147_v15  ;;  %v890_v24 = vpop.f32.mrb[2].mxu0  ;;  %v972_v25 = vpop.f32.mrb[2].mxu1 }
 0x158   :  { %v1141_v26 = vmul.f32 -1.442695, %v1145_v18  ;;  %v1143_v27 = vmul.f32 -1.442695, %v1147_v19  ;;  %v891_v28 = vpop.f32.mrb[3].mxu0  ;;  %v973_v29 = vpop.f32.mrb[3].mxu1 }
 0x159   :  { %v1142_v30 = vmul.f32 -1.442695, %v1146_v22  ;;  %v1144_v31 = vmul.f32 -1.442695, %v1148_v23 }
 0x15a   :  { %1353 = vpow2.f32 %v1141_v26 }
 0x15b   :  { %1355 = vpow2.f32 %v1143_v27 }
 0x15c   :  { %1357 = vpow2.f32 %v1142_v30 }
 0x15d   :  { %1359 = vpow2.f32 %v1144_v31 }
 0x164   :  { %v1354_v13 = vpop.eup %1353 }
 0x165   :  { %v1356_v32 = vpop.eup %1355  ;;  %v987_v33 = vadd.f32 1.0, %v1354_v13 }
 0x166   :  { %v1358_v34 = vpop.eup %1357  ;;  %v989_v35 = vadd.f32 1.0, %v1356_v32 }
 0x167   :  { %v1360_v36 = vpop.eup %1359  ;;  %1361 = vrcp.f32 %v987_v33  ;;  %v988_v37 = vadd.f32 1.0, %v1358_v34 }
 0x168   :  { %1363 = vrcp.f32 %v989_v35  ;;  %v990_v38 = vadd.f32 1.0, %v1360_v36 }
 0x169   :  { %1365 = vrcp.f32 %v988_v37 }
 0x16a   :  { %1367 = vrcp.f32 %v990_v38 }
 0x171   :  { %v1362_v39 = vpop.eup %1361 }
 0x172   :  { %v1364_v40 = vpop.eup %1363 }
 0x173   :  { %v1366_v41 = vpop.eup %1365 }
 0x174   :  { %v1368_v42 = vpop.eup %1367  ;;  %v1003_v43 = vcombine.low %v1362_v39, %v1366_v41 }
 0x175   :  { %v1004_v44 = vcombine.low %v1364_v40, %v1368_v42 }
 0x176   :  { %1007 = vst [vmem:[%s1796_s3] sm:$0xff] %v1003_v43 }
 0x177   :  { %1008 = vst [vmem:[%s1796_s3 + $0x8] sm:$0xff] %v1004_v44 }

</bundles_post_ra>
